<compile_context>
chip_gen: v7x
topology: tpu7x:2x2x1
jax: 0.10.0
libtpu: 0.0.40
codegen_flags: <defaults>
</compile_context>

<pallas_src>
import math

import jax
import jax.numpy as jnp
from jax import lax
from jax.experimental import pallas as pl
from jax.experimental.pallas import tpu as pltpu


def _round_up(v, m):
    return ((v + m - 1) // m) * m


_TC = 8  # time-chunk for the scan (one full sublane slab)


# ----------------------------- Pallas kernels -----------------------------

def _linear_kernel(x_ref, w_ref, b_ref, o_ref, acc_ref):
    # x: (tm, tk) f32 (cast to bf16 for the MXU); w: (tk, tn) bf16; b: (1, tn) f32.
    @pl.when(pl.program_id(2) == 0)
    def _():
        acc_ref[...] = jnp.zeros_like(acc_ref)

    acc_ref[...] += jnp.dot(x_ref[...].astype(jnp.bfloat16), w_ref[...],
                            preferred_element_type=jnp.float32)

    @pl.when(pl.program_id(2) == pl.num_programs(2) - 1)
    def _():
        o_ref[...] = acc_ref[...] + b_ref[...]


def _linear_res_kernel(x_ref, w_ref, b_ref, r_ref, o_ref, acc_ref):
    # Same as _linear_kernel but fuses a residual add (the layer's `+ x`) in the epilogue.
    @pl.when(pl.program_id(2) == 0)
    def _():
        acc_ref[...] = jnp.zeros_like(acc_ref)

    acc_ref[...] += jnp.dot(x_ref[...].astype(jnp.bfloat16), w_ref[...],
                            preferred_element_type=jnp.float32)

    @pl.when(pl.program_id(2) == pl.num_programs(2) - 1)
    def _():
        o_ref[...] = acc_ref[...] + b_ref[...] + r_ref[...]


def _rmsnorm_kernel(x_ref, g_ref, o_ref):
    x = x_ref[...]
    ms = jnp.mean(x * x, axis=-1, keepdims=True)
    o_ref[...] = x * lax.rsqrt(ms + 1e-5) * g_ref[...]


def _conv_silu_kernel(x_ref, w_ref, b_ref, o_ref):
    # Depthwise causal conv1d + SiLU.  x: (L, Dblk); w: (K, Dblk); b: (1, Dblk).
    # out[i] = sum_k w[k] * x[i - (K-1-k)]  (zero for negative indices).
    x = x_ref[...]
    w = w_ref[...]
    K = w.shape[0]
    acc = w[K - 1:K, :] * x                                    # shift-0 term
    row = lax.broadcasted_iota(jnp.int32, x.shape, 0)
    for k in range(K - 1):                                     # K is tiny (d_conv=4)
        s = K - 1 - k
        shifted = pltpu.roll(x, shift=s, axis=0)               # XLU sublane rotate
        shifted = jnp.where(row >= s, shifted, 0.0)            # zero the wrapped rows
        acc = acc + w[k:k + 1, :] * shifted
    acc = acc + b_ref[...]
    o_ref[...] = acc * jax.nn.sigmoid(acc)                     # SiLU (fp32 VPU/EUP)


def _scan_kernel(u_ref, dt_ref, b_ref, c_ref, res_ref, a_ref, d_ref, o_ref):
    # Per-(batch, Din-block) selective scan, time kept inside the kernel.
    #   u, dt_raw, res, out : (L, Dblk)
    #   B, C                : (L, N)      (time on sublanes, state dim on lanes)
    #   a                   : (N, Dblk)   (= (-exp(A_log)).T, precomputed at init)
    #   d                   : (1, Dblk)
    L, Dblk = u_ref.shape
    N = a_ref.shape[0]
    A = a_ref[...]
    Dv = d_ref[...]
    nchunk = L // _TC

    def chunk_body(c, st):
        off = pl.multiple_of(c * _TC, _TC)
        u_c = u_ref[pl.ds(off, _TC), :]                         # (TC, Dblk)
        delta_c = jax.nn.softplus(dt_ref[pl.ds(off, _TC), :])   # (TC, Dblk)
        res_c = res_ref[pl.ds(off, _TC), :]                     # (TC, Dblk)
        B_c = b_ref[pl.ds(off, _TC), :]                         # (TC, N)
        C_c = c_ref[pl.ds(off, _TC), :]                         # (TC, N)

        # Bulk per-chunk precompute: one lanes->sublanes relayout of B/C per chunk
        # (not per step) and one bulk EUP exp for the whole chunk.
        dA = jnp.exp(delta_c[:, None, :] * A[None, :, :])       # (TC, N, Dblk)
        dBu = (delta_c * u_c)[:, None, :] * B_c[:, :, None]     # (TC, N, Dblk)
        C3 = C_c[:, :, None]                                    # (TC, N, 1)

        ys = []
        for t in range(_TC):                                    # short static unroll
            st = dA[t] * st + dBu[t]                            # (N, Dblk) VPU
            ys.append(jnp.sum(st * C3[t], axis=0, keepdims=True))  # (1, Dblk) XLU reduce
        y = jnp.concatenate(ys, axis=0)                         # (TC, Dblk)
        y = y + u_c * Dv                                        # + D * u
        y = y * (res_c * jax.nn.sigmoid(res_c))                 # * silu(res)
        o_ref[pl.ds(off, _TC), :] = y                           # full-slab store
        return st

    st0 = jnp.zeros((N, Dblk), jnp.float32)
    lax.fori_loop(0, nchunk, chunk_body, st0)


# ----------------------------- wrappers -----------------------------

def linear(x2d, w_t, b=None, residual=None, *, tm=256, tn=256, tk=512):
    """x2d: (M, K) f32; w_t: (K, N) bf16 (pre-transposed); b: (N,) or None;
    residual: optional (M, N) f32 added in the epilogue.  Returns (M, N) f32."""
    M, K = x2d.shape
    N = w_t.shape[1]
    tm = min(tm, _round_up(M, 8))
    tn = min(tn, _round_up(N, 128))
    tk = min(tk, _round_up(K, 128))
    Mp, Np, Kp = _round_up(M, tm), _round_up(N, tn), _round_up(K, tk)

    x_p = jnp.pad(x2d, ((0, Mp - M), (0, Kp - K))) if (Mp, Kp) != (M, K) else x2d
    w_p = jnp.pad(w_t, ((0, Kp - K), (0, Np - N))) if (Kp, Np) != (K, N) else w_t
    b2 = jnp.zeros((1, N), jnp.float32) if b is None else b.reshape(1, N).astype(jnp.float32)
    b_p = jnp.pad(b2, ((0, 0), (0, Np - N))) if Np != N else b2

    grid = (Mp // tm, Np // tn, Kp // tk)
    x_spec = pl.BlockSpec((tm, tk), lambda i, j, k: (i, k))
    w_spec = pl.BlockSpec((tk, tn), lambda i, j, k: (k, j))
    b_spec = pl.BlockSpec((1, tn), lambda i, j, k: (0, j))
    o_spec = pl.BlockSpec((tm, tn), lambda i, j, k: (i, j))
    cparams = pltpu.CompilerParams(
        dimension_semantics=("parallel", "parallel", "arbitrary"),
        vmem_limit_bytes=32 * 1024 * 1024)

    if residual is None:
        out = pl.pallas_call(
            _linear_kernel,
            out_shape=jax.ShapeDtypeStruct((Mp, Np), jnp.float32),
            grid=grid,
            in_specs=[x_spec, w_spec, b_spec],
            out_specs=o_spec,
            scratch_shapes=[pltpu.VMEM((tm, tn), jnp.float32)],
            compiler_params=cparams,
        )(x_p, w_p, b_p)
    else:
        r_p = (jnp.pad(residual, ((0, Mp - M), (0, Np - N)))
               if (Mp, Np) != (M, N) else residual)
        r_spec = pl.BlockSpec((tm, tn), lambda i, j, k: (i, j))
        out = pl.pallas_call(
            _linear_res_kernel,
            out_shape=jax.ShapeDtypeStruct((Mp, Np), jnp.float32),
            grid=grid,
            in_specs=[x_spec, w_spec, b_spec, r_spec],
            out_specs=o_spec,
            scratch_shapes=[pltpu.VMEM((tm, tn), jnp.float32)],
            compiler_params=cparams,
        )(x_p, w_p, b_p, r_p)

    return out[:M, :N] if (Mp, Np) != (M, N) else out


def rmsnorm(x2d, g):
    M, D = x2d.shape
    tm = min(512, _round_up(M, 8))
    Mp = _round_up(M, tm)
    x_p = jnp.pad(x2d, ((0, Mp - M), (0, 0))) if Mp != M else x2d
    out = pl.pallas_call(
        _rmsnorm_kernel,
        out_shape=jax.ShapeDtypeStruct((Mp, D), jnp.float32),
        grid=(Mp // tm,),
        in_specs=[pl.BlockSpec((tm, D), lambda i: (i, 0)),
                  pl.BlockSpec((1, D), lambda i: (0, 0))],
        out_specs=pl.BlockSpec((tm, D), lambda i: (i, 0)),
        compiler_params=pltpu.CompilerParams(dimension_semantics=("parallel",)),
    )(x_p, g.reshape(1, D))
    return out[:M] if Mp != M else out


def depthwise_conv_silu(x, w_kd, bias, *, dblk=512):
    """x: (B, L, D); w_kd: (K, D); bias: (D,) → (B, L, D)."""
    Bsz, L, D = x.shape
    K = w_kd.shape[0]
    dblk = min(dblk, D)
    if D % dblk != 0:
        dblk = D
    return pl.pallas_call(
        _conv_silu_kernel,
        out_shape=jax.ShapeDtypeStruct((Bsz, L, D), jnp.float32),
        grid=(Bsz, D // dblk),
        in_specs=[pl.BlockSpec((None, L, dblk), lambda i, j: (i, 0, j)),
                  pl.BlockSpec((K, dblk), lambda i, j: (0, j)),
                  pl.BlockSpec((1, dblk), lambda i, j: (0, j))],
        out_specs=pl.BlockSpec((None, L, dblk), lambda i, j: (i, 0, j)),
        compiler_params=pltpu.CompilerParams(
            dimension_semantics=("parallel", "parallel")),
    )(x, w_kd, bias.reshape(1, D))


def selective_scan(u, dt_raw, Bm, Cm, res, A_neg_t, Dv, *, dblk=512):
    """u/dt_raw/res: (B,L,Din); Bm/Cm: (B,L,N); A_neg_t: (N,Din); Dv: (1,Din)."""
    Bsz, L, Din = u.shape
    N = A_neg_t.shape[0]
    assert L % _TC == 0, "sequence length must be a multiple of the time chunk (8)"
    # TODO(synk): ragged L would need a tail chunk / masking.
    dblk = min(dblk, Din)
    if Din % dblk != 0:
        dblk = Din
    return pl.pallas_call(
        _scan_kernel,
        out_shape=jax.ShapeDtypeStruct((Bsz, L, Din), jnp.float32),
        grid=(Bsz, Din // dblk),
        in_specs=[pl.BlockSpec((None, L, dblk), lambda i, j: (i, 0, j)),   # u
                  pl.BlockSpec((None, L, dblk), lambda i, j: (i, 0, j)),   # dt_raw
                  pl.BlockSpec((None, L, N), lambda i, j: (i, 0, 0)),      # B (L,N layout)
                  pl.BlockSpec((None, L, N), lambda i, j: (i, 0, 0)),      # C (L,N layout)
                  pl.BlockSpec((None, L, dblk), lambda i, j: (i, 0, j)),   # res
                  pl.BlockSpec((N, dblk), lambda i, j: (0, j)),            # A
                  pl.BlockSpec((1, dblk), lambda i, j: (0, j))],           # D
        out_specs=pl.BlockSpec((None, L, dblk), lambda i, j: (i, 0, j)),
        compiler_params=pltpu.CompilerParams(
            dimension_semantics=("parallel", "parallel")),
    )(u, dt_raw, Bm, Cm, res, A_neg_t, Dv)


# ----------------------------- model -----------------------------

def make_params(key, vocab, dim, depth, d_state, expand, d_conv):
    dim_inner = dim * expand
    dt_rank = math.ceil(dim / 16)
    keys = iter(jax.random.split(key, 1 + depth * 5))

    def nrm(k, shape, scale=0.02):
        return scale * jax.random.normal(k, shape, jnp.float32)

    emb = nrm(next(keys), (vocab, dim))
    A = jnp.tile(jnp.arange(1, d_state + 1, dtype=jnp.float32)[None, :], (dim_inner, 1))
    A_log = jnp.log(A)

    params = {
        "embedding": emb,                                       # f32, used for gather
        "lm_head_w": jnp.transpose(emb).astype(jnp.bfloat16),   # tied head, (dim, vocab)
        "norm_g": jnp.ones((dim,), jnp.float32),
        "layers": [],
    }
    for _ in range(depth):
        params["layers"].append({
            # matmul weights stored pre-transposed (K, N) in bf16 (MXU operands);
            # element-wise parameters stay fp32 (friendly to v5e VPU/EUP).
            "in_proj_w": nrm(next(keys), (dim, 2 * dim_inner)).astype(jnp.bfloat16),
            "conv_w": nrm(next(keys), (d_conv, dim_inner)),     # depthwise kernel (K, Din)
            "conv_b": jnp.zeros((dim_inner,), jnp.float32),
            "x_proj_w": nrm(next(keys), (dim_inner, dt_rank + 2 * d_state)).astype(jnp.bfloat16),
            "dt_proj_w": nrm(next(keys), (dt_rank, dim_inner)).astype(jnp.bfloat16),
            "dt_proj_b": jnp.zeros((dim_inner,), jnp.float32),
            "A_neg_t": jnp.transpose(-jnp.exp(A_log)),          # (N, Din), hoisted from forward
            "D": jnp.ones((dim_inner,), jnp.float32),
            "out_proj_w": nrm(next(keys), (dim_inner, dim)).astype(jnp.bfloat16),
        })
    return params


def mamba_block(x, x_residual, p, dim, dim_inner, d_state, dt_rank):
    B, L, _ = x.shape
    x2 = x.reshape(B * L, dim)
    xr = linear(x2, p["in_proj_w"])                              # (B*L, 2*Din)
    x_part = xr[:, :dim_inner].reshape(B, L, dim_inner)
    res = xr[:, dim_inner:].reshape(B, L, dim_inner)

    xc = depthwise_conv_silu(x_part, p["conv_w"], p["conv_b"])   # (B, L, Din)

    xdbl = linear(xc.reshape(B * L, dim_inner), p["x_proj_w"])   # (B*L, dt_rank+2N)
    dt_in = xdbl[:, :dt_rank]
    Bm = xdbl[:, dt_rank:dt_rank + d_state].reshape(B, L, d_state)
    Cm = xdbl[:, dt_rank + d_state:].reshape(B, L, d_state)
    dt_raw = linear(dt_in, p["dt_proj_w"], p["dt_proj_b"]).reshape(B, L, dim_inner)

    y = selective_scan(xc, dt_raw, Bm, Cm, res, p["A_neg_t"],
                       p["D"].reshape(1, dim_inner))             # (B, L, Din)

    # out_proj with the layer residual ('+ x') fused into the matmul epilogue
    out = linear(y.reshape(B * L, dim_inner), p["out_proj_w"],
                 residual=x_residual.reshape(B * L, dim))
    return out.reshape(B, L, dim)


def mamba_forward(tokens, params, cfg):
    B, L = tokens.shape
    dim = cfg["dim"]
    x = params["embedding"][tokens]        # embedding gather — plain-JAX glue
    # (context / img_proj path unused: context=None in this test)
    for lp in params["layers"]:
        xn = rmsnorm(x.reshape(B * L, dim), params["norm_g"]).reshape(B, L, dim)
        x = mamba_block(xn, x, lp, dim, cfg["dim_inner"], cfg["d_state"], cfg["dt_rank"])
    xf = rmsnorm(x.reshape(B * L, dim), params["norm_g"])
    logits = linear(xf, params["lm_head_w"])                     # tied lm_head
    return logits.reshape(B, L, -1)


# ----------------------------- main -----------------------------

if __name__ == "__main__":
    vocab, dim, depth, d_state, expand, d_conv = 32, 32, 2, 16, 2, 4
    B, L = 2, 8
    cfg = dict(dim=dim, dim_inner=dim * expand, d_state=d_state,
               dt_rank=math.ceil(dim / 16), d_conv=d_conv)

    key = jax.random.PRNGKey(0)
    kp, kt = jax.random.split(key)
    params = make_params(kp, vocab, dim, depth, d_state, expand, d_conv)
    tokens = jax.random.randint(kt, (B, L), 0, vocab, dtype=jnp.int32)

    logits = jax.jit(lambda t: mamba_forward(t, params, cfg))(tokens)
    jax.block_until_ready(logits)
    assert logits.shape == (B, L, vocab), logits.shape
    assert bool(jnp.all(jnp.isfinite(logits)))
    print("KERNEL_OK")
</pallas_src>

<mosaic_0001>
module attributes {stable_mosaic.version = 11 : i64} {
  func.func @_conv_silu_kernel(%arg0: i32, %arg1: i32, %arg2: memref<1x8x64xf32, #tpu.memory_space<vmem>>, %arg3: memref<4x64xf32, #tpu.memory_space<vmem>>, %arg4: memref<1x64xf32, #tpu.memory_space<vmem>>, %arg5: memref<1x8x64xf32, #tpu.memory_space<vmem>>) attributes {dimension_semantics = [#tpu.dimension_semantics<parallel>, #tpu.dimension_semantics<parallel>], iteration_bounds = array<i64: 2, 1>, scalar_prefetch = 0 : i64, scratch_operands = 0 : i64, tpu.core_type = #tpu.core_type<tc>, window_params = [{transform_indices = @transform_0, window_bounds = array<i64: 1, 8, 64>}, {transform_indices = @transform_1, window_bounds = array<i64: 4, 64>}, {transform_indices = @transform_2, window_bounds = array<i64: 1, 64>}, {transform_indices = @transform_3, window_bounds = array<i64: 1, 8, 64>}]} {
    %c0 = arith.constant 0 : index
    %c0_0 = arith.constant 0 : index
    %c0_1 = arith.constant 0 : index
    %0 = vector.load %arg2[%c0, %c0_0, %c0_1] : memref<1x8x64xf32, #tpu.memory_space<vmem>>, vector<1x8x64xf32>
    %1 = vector.shape_cast %0 : vector<1x8x64xf32> to vector<8x64xf32>
    %c0_2 = arith.constant 0 : index
    %c0_3 = arith.constant 0 : index
    %2 = vector.load %arg3[%c0_2, %c0_3] : memref<4x64xf32, #tpu.memory_space<vmem>>, vector<4x64xf32>
    %3 = vector.extract_strided_slice %2 {offsets = [3, 0], sizes = [1, 64], strides = [1, 1]} : vector<4x64xf32> to vector<1x64xf32>
    %4 = vector.broadcast %3 : vector<1x64xf32> to vector<8x64xf32>
    %5 = arith.mulf %4, %1 : vector<8x64xf32>
    %6 = tpu.iota {dimensions = array<i32: 0>} : vector<8x64xi32>
    %c3_i32 = arith.constant 3 : i32
    %7 = tpu.dynamic_rotate %1 by %c3_i32 dim 0 : vector<8x64xf32>, i32 -> vector<8x64xf32>
    %c3_i32_4 = arith.constant 3 : i32
    %8 = vector.broadcast %c3_i32_4 : i32 to vector<8x64xi32>
    %9 = arith.cmpi sge, %6, %8 : vector<8x64xi32>
    %cst = arith.constant 0.000000e+00 : f32
    %10 = vector.broadcast %cst : f32 to vector<8x64xf32>
    %11 = arith.select %9, %7, %10 : vector<8x64xi1>, vector<8x64xf32>
    %12 = vector.extract_strided_slice %2 {offsets = [0, 0], sizes = [1, 64], strides = [1, 1]} : vector<4x64xf32> to vector<1x64xf32>
    %13 = vector.broadcast %12 : vector<1x64xf32> to vector<8x64xf32>
    %14 = arith.mulf %13, %11 : vector<8x64xf32>
    %15 = arith.addf %5, %14 : vector<8x64xf32>
    %c2_i32 = arith.constant 2 : i32
    %16 = tpu.dynamic_rotate %1 by %c2_i32 dim 0 : vector<8x64xf32>, i32 -> vector<8x64xf32>
    %c2_i32_5 = arith.constant 2 : i32
    %17 = vector.broadcast %c2_i32_5 : i32 to vector<8x64xi32>
    %18 = arith.cmpi sge, %6, %17 : vector<8x64xi32>
    %cst_6 = arith.constant 0.000000e+00 : f32
    %19 = vector.broadcast %cst_6 : f32 to vector<8x64xf32>
    %20 = arith.select %18, %16, %19 : vector<8x64xi1>, vector<8x64xf32>
    %21 = vector.extract_strided_slice %2 {offsets = [1, 0], sizes = [1, 64], strides = [1, 1]} : vector<4x64xf32> to vector<1x64xf32>
    %22 = vector.broadcast %21 : vector<1x64xf32> to vector<8x64xf32>
    %23 = arith.mulf %22, %20 : vector<8x64xf32>
    %24 = arith.addf %15, %23 : vector<8x64xf32>
    %c1_i32 = arith.constant 1 : i32
    %25 = tpu.dynamic_rotate %1 by %c1_i32 dim 0 : vector<8x64xf32>, i32 -> vector<8x64xf32>
    %c1_i32_7 = arith.constant 1 : i32
    %26 = vector.broadcast %c1_i32_7 : i32 to vector<8x64xi32>
    %27 = arith.cmpi sge, %6, %26 : vector<8x64xi32>
    %cst_8 = arith.constant 0.000000e+00 : f32
    %28 = vector.broadcast %cst_8 : f32 to vector<8x64xf32>
    %29 = arith.select %27, %25, %28 : vector<8x64xi1>, vector<8x64xf32>
    %30 = vector.extract_strided_slice %2 {offsets = [2, 0], sizes = [1, 64], strides = [1, 1]} : vector<4x64xf32> to vector<1x64xf32>
    %31 = vector.broadcast %30 : vector<1x64xf32> to vector<8x64xf32>
    %32 = arith.mulf %31, %29 : vector<8x64xf32>
    %33 = arith.addf %24, %32 : vector<8x64xf32>
    %c0_9 = arith.constant 0 : index
    %c0_10 = arith.constant 0 : index
    %34 = vector.load %arg4[%c0_9, %c0_10] : memref<1x64xf32, #tpu.memory_space<vmem>>, vector<1x64xf32>
    %35 = vector.broadcast %34 : vector<1x64xf32> to vector<8x64xf32>
    %36 = arith.addf %33, %35 : vector<8x64xf32>
    %37 = arith.negf %36 : vector<8x64xf32>
    %38 = math.exp %37 : vector<8x64xf32>
    %cst_11 = arith.constant 1.000000e+00 : f32
    %39 = vector.broadcast %cst_11 : f32 to vector<8x64xf32>
    %40 = arith.addf %39, %38 : vector<8x64xf32>
    %41 = arith.divf %39, %40 : vector<8x64xf32>
    %42 = arith.mulf %36, %41 : vector<8x64xf32>
    %c0_12 = arith.constant 0 : index
    %c0_13 = arith.constant 0 : index
    %c0_14 = arith.constant 0 : index
    %43 = vector.load %arg5[%c0_12, %c0_13, %c0_14] : memref<1x8x64xf32, #tpu.memory_space<vmem>>, vector<1x8x64xf32>
    %44 = vector.shape_cast %43 : vector<1x8x64xf32> to vector<8x64xf32>
    %45 = vector.shape_cast %42 : vector<8x64xf32> to vector<1x8x64xf32>
    tpu.vector_store %arg5[%c0_12, %c0_13, %c0_14], %45 {strides = array<i32>} : memref<1x8x64xf32, #tpu.memory_space<vmem>>, vector<1x8x64xf32>,
    return
  }
  func.func @transform_0(%arg0: i32, %arg1: i32) -> (i32, i32, i32) {
    %c0_i32 = arith.constant 0 : i32
    %c0_i32_0 = arith.constant 0 : i32
    return %arg0, %c0_i32, %arg1 : i32, i32, i32
  }
  func.func @transform_1(%arg0: i32, %arg1: i32) -> (i32, i32) {
    %c0_i32 = arith.constant 0 : i32
    %c0_i32_0 = arith.constant 0 : i32
    return %c0_i32, %arg1 : i32, i32
  }
  func.func @transform_2(%arg0: i32, %arg1: i32) -> (i32, i32) {
    %c0_i32 = arith.constant 0 : i32
    %c0_i32_0 = arith.constant 0 : i32
    return %c0_i32, %arg1 : i32, i32
  }
  func.func @transform_3(%arg0: i32, %arg1: i32) -> (i32, i32, i32) {
    %c0_i32 = arith.constant 0 : i32
    %c0_i32_0 = arith.constant 0 : i32
    return %arg0, %c0_i32, %arg1 : i32, i32, i32
  }
}

module attributes {stable_mosaic.version = 11 : i64} {
  func.func @_scan_kernel(%arg0: i32, %arg1: i32, %arg2: memref<1x8x64xf32, #tpu.memory_space<vmem>>, %arg3: memref<1x8x64xf32, #tpu.memory_space<vmem>>, %arg4: memref<1x8x16xf32, #tpu.memory_space<vmem>>, %arg5: memref<1x8x16xf32, #tpu.memory_space<vmem>>, %arg6: memref<1x8x64xf32, #tpu.memory_space<vmem>>, %arg7: memref<16x64xf32, #tpu.memory_space<vmem>>, %arg8: memref<1x64xf32, #tpu.memory_space<vmem>>, %arg9: memref<1x8x64xf32, #tpu.memory_space<vmem>>) attributes {dimension_semantics = [#tpu.dimension_semantics<parallel>, #tpu.dimension_semantics<parallel>], iteration_bounds = array<i64: 2, 1>, scalar_prefetch = 0 : i64, scratch_operands = 0 : i64, tpu.core_type = #tpu.core_type<tc>, window_params = [{transform_indices = @transform_0, window_bounds = array<i64: 1, 8, 64>}, {transform_indices = @transform_1, window_bounds = array<i64: 1, 8, 64>}, {transform_indices = @transform_2, window_bounds = array<i64: 1, 8, 16>}, {transform_indices = @transform_3, window_bounds = array<i64: 1, 8, 16>}, {transform_indices = @transform_4, window_bounds = array<i64: 1, 8, 64>}, {transform_indices = @transform_5, window_bounds = array<i64: 16, 64>}, {transform_indices = @transform_6, window_bounds = array<i64: 1, 64>}, {transform_indices = @transform_7, window_bounds = array<i64: 1, 8, 64>}]} {
    %c0 = arith.constant 0 : index
    %c0_0 = arith.constant 0 : index
    %0 = vector.load %arg7[%c0, %c0_0] : memref<16x64xf32, #tpu.memory_space<vmem>>, vector<16x64xf32>
    %c0_1 = arith.constant 0 : index
    %c0_2 = arith.constant 0 : index
    %1 = vector.load %arg8[%c0_1, %c0_2] : memref<1x64xf32, #tpu.memory_space<vmem>>, vector<1x64xf32>
    %cst = arith.constant 0.000000e+00 : f32
    %2 = vector.broadcast %cst : f32 to vector<16x64xf32>
    %c0_i32 = arith.constant 0 : i32
    %c8_i32 = arith.constant 8 : i32
    %3 = arith.muli %c0_i32, %c8_i32 : i32
    %4 = tpu.assume_multiple %3, 8 : i32
    %c0_3 = arith.constant 0 : index
    %5 = arith.index_cast %4 : i32 to index
    %c0_4 = arith.constant 0 : index
    %6 = vector.load %arg2[%c0_3, %5, %c0_4] : memref<1x8x64xf32, #tpu.memory_space<vmem>>, vector<1x8x64xf32>
    %7 = vector.shape_cast %6 : vector<1x8x64xf32> to vector<8x64xf32>
    %c0_5 = arith.constant 0 : index
    %8 = arith.index_cast %4 : i32 to index
    %c0_6 = arith.constant 0 : index
    %9 = vector.load %arg3[%c0_5, %8, %c0_6] : memref<1x8x64xf32, #tpu.memory_space<vmem>>, vector<1x8x64xf32>
    %10 = vector.shape_cast %9 : vector<1x8x64xf32> to vector<8x64xf32>
    %cst_7 = arith.constant 0.000000e+00 : f32
    %11 = vector.broadcast %cst_7 : f32 to vector<8x64xf32>
    %12 = arith.maximumf %10, %11 : vector<8x64xf32>
    %13 = vector.broadcast %cst_7 : f32 to vector<8x64xf32>
    %14 = arith.subf %10, %13 : vector<8x64xf32>
    %15 = arith.cmpf one, %14, %14 : vector<8x64xf32>
    %16 = vector.broadcast %cst_7 : f32 to vector<8x64xf32>
    %17 = arith.addf %10, %16 : vector<8x64xf32>
    %18 = math.absf %14 : vector<8x64xf32>
    %cst_8 = arith.constant 0.000000e+00 : f32
    %19 = vector.broadcast %cst_8 : f32 to vector<8x64xf32>
    %20 = arith.subf %19, %18 : vector<8x64xf32>
    %21 = math.exp %20 : vector<8x64xf32>
    %22 = math.log1p %21 : vector<8x64xf32>
    %23 = arith.addf %12, %22 : vector<8x64xf32>
    %24 = arith.select %15, %17, %23 : vector<8x64xi1>, vector<8x64xf32>
    %c0_9 = arith.constant 0 : index
    %25 = arith.index_cast %4 : i32 to index
    %c0_10 = arith.constant 0 : index
    %26 = vector.load %arg6[%c0_9, %25, %c0_10] : memref<1x8x64xf32, #tpu.memory_space<vmem>>, vector<1x8x64xf32>
    %27 = vector.shape_cast %26 : vector<1x8x64xf32> to vector<8x64xf32>
    %c0_11 = arith.constant 0 : index
    %28 = arith.index_cast %4 : i32 to index
    %c0_12 = arith.constant 0 : index
    %29 = vector.load %arg4[%c0_11, %28, %c0_12] : memref<1x8x16xf32, #tpu.memory_space<vmem>>, vector<1x8x16xf32>
    %30 = vector.shape_cast %29 : vector<1x8x16xf32> to vector<8x16xf32>
    %c0_13 = arith.constant 0 : index
    %31 = arith.index_cast %4 : i32 to index
    %c0_14 = arith.constant 0 : index
    %32 = vector.load %arg5[%c0_13, %31, %c0_14] : memref<1x8x16xf32, #tpu.memory_space<vmem>>, vector<1x8x16xf32>
    %33 = vector.shape_cast %32 : vector<1x8x16xf32> to vector<8x16xf32>
    %34 = vector.shape_cast %24 : vector<8x64xf32> to vector<8x1x64xf32>
    %35 = vector.shape_cast %0 : vector<16x64xf32> to vector<1x16x64xf32>
    %36 = vector.broadcast %34 : vector<8x1x64xf32> to vector<8x16x64xf32>
    %37 = vector.broadcast %35 : vector<1x16x64xf32> to vector<8x16x64xf32>
    %38 = arith.mulf %36, %37 : vector<8x16x64xf32>
    %39 = math.exp %38 : vector<8x16x64xf32>
    %40 = arith.mulf %24, %7 : vector<8x64xf32>
    %41 = vector.shape_cast %40 : vector<8x64xf32> to vector<8x1x64xf32>
    %42 = vector.shape_cast %30 : vector<8x16xf32> to vector<8x16x1xf32>
    %43 = vector.broadcast %41 : vector<8x1x64xf32> to vector<8x16x64xf32>
    %44 = vector.broadcast %42 : vector<8x16x1xf32> to vector<8x16x64xf32>
    %45 = arith.mulf %43, %44 : vector<8x16x64xf32>
    %46 = vector.shape_cast %33 : vector<8x16xf32> to vector<8x16x1xf32>
    %47 = vector.extract_strided_slice %39 {offsets = [0, 0, 0], sizes = [1, 16, 64], strides = [1, 1, 1]} : vector<8x16x64xf32> to vector<1x16x64xf32>
    %48 = vector.shape_cast %47 : vector<1x16x64xf32> to vector<16x64xf32>
    %49 = arith.mulf %48, %2 : vector<16x64xf32>
    %50 = vector.extract_strided_slice %45 {offsets = [0, 0, 0], sizes = [1, 16, 64], strides = [1, 1, 1]} : vector<8x16x64xf32> to vector<1x16x64xf32>
    %51 = vector.shape_cast %50 : vector<1x16x64xf32> to vector<16x64xf32>
    %52 = arith.addf %49, %51 : vector<16x64xf32>
    %53 = vector.extract_strided_slice %46 {offsets = [0, 0, 0], sizes = [1, 16, 1], strides = [1, 1, 1]} : vector<8x16x1xf32> to vector<1x16x1xf32>
    %54 = vector.shape_cast %53 : vector<1x16x1xf32> to vector<16x1xf32>
    %55 = vector.broadcast %54 : vector<16x1xf32> to vector<16x64xf32>
    %56 = arith.mulf %52, %55 : vector<16x64xf32>
    %cst_15 = arith.constant dense<0.000000e+00> : vector<64xf32>
    %57 = vector.multi_reduction <add>, %56, %cst_15 [0] : vector<16x64xf32> to vector<64xf32>
    %58 = vector.shape_cast %57 : vector<64xf32> to vector<1x64xf32>
    %59 = vector.extract_strided_slice %39 {offsets = [1, 0, 0], sizes = [1, 16, 64], strides = [1, 1, 1]} : vector<8x16x64xf32> to vector<1x16x64xf32>
    %60 = vector.shape_cast %59 : vector<1x16x64xf32> to vector<16x64xf32>
    %61 = arith.mulf %60, %52 : vector<16x64xf32>
    %62 = vector.extract_strided_slice %45 {offsets = [1, 0, 0], sizes = [1, 16, 64], strides = [1, 1, 1]} : vector<8x16x64xf32> to vector<1x16x64xf32>
    %63 = vector.shape_cast %62 : vector<1x16x64xf32> to vector<16x64xf32>
    %64 = arith.addf %61, %63 : vector<16x64xf32>
    %65 = vector.extract_strided_slice %46 {offsets = [1, 0, 0], sizes = [1, 16, 1], strides = [1, 1, 1]} : vector<8x16x1xf32> to vector<1x16x1xf32>
    %66 = vector.shape_cast %65 : vector<1x16x1xf32> to vector<16x1xf32>
    %67 = vector.broadcast %66 : vector<16x1xf32> to vector<16x64xf32>
    %68 = arith.mulf %64, %67 : vector<16x64xf32>
    %cst_16 = arith.constant dense<0.000000e+00> : vector<64xf32>
    %69 = vector.multi_reduction <add>, %68, %cst_16 [0] : vector<16x64xf32> to vector<64xf32>
    %70 = vector.shape_cast %69 : vector<64xf32> to vector<1x64xf32>
    %71 = vector.extract_strided_slice %39 {offsets = [2, 0, 0], sizes = [1, 16, 64], strides = [1, 1, 1]} : vector<8x16x64xf32> to vector<1x16x64xf32>
    %72 = vector.shape_cast %71 : vector<1x16x64xf32> to vector<16x64xf32>
    %73 = arith.mulf %72, %64 : vector<16x64xf32>
    %74 = vector.extract_strided_slice %45 {offsets = [2, 0, 0], sizes = [1, 16, 64], strides = [1, 1, 1]} : vector<8x16x64xf32> to vector<1x16x64xf32>
    %75 = vector.shape_cast %74 : vector<1x16x64xf32> to vector<16x64xf32>
    %76 = arith.addf %73, %75 : vector<16x64xf32>
    %77 = vector.extract_strided_slice %46 {offsets = [2, 0, 0], sizes = [1, 16, 1], strides = [1, 1, 1]} : vector<8x16x1xf32> to vector<1x16x1xf32>
    %78 = vector.shape_cast %77 : vector<1x16x1xf32> to vector<16x1xf32>
    %79 = vector.broadcast %78 : vector<16x1xf32> to vector<16x64xf32>
    %80 = arith.mulf %76, %79 : vector<16x64xf32>
    %cst_17 = arith.constant dense<0.000000e+00> : vector<64xf32>
    %81 = vector.multi_reduction <add>, %80, %cst_17 [0] : vector<16x64xf32> to vector<64xf32>
    %82 = vector.shape_cast %81 : vector<64xf32> to vector<1x64xf32>
    %83 = vector.extract_strided_slice %39 {offsets = [3, 0, 0], sizes = [1, 16, 64], strides = [1, 1, 1]} : vector<8x16x64xf32> to vector<1x16x64xf32>
    %84 = vector.shape_cast %83 : vector<1x16x64xf32> to vector<16x64xf32>
    %85 = arith.mulf %84, %76 : vector<16x64xf32>
    %86 = vector.extract_strided_slice %45 {offsets = [3, 0, 0], sizes = [1, 16, 64], strides = [1, 1, 1]} : vector<8x16x64xf32> to vector<1x16x64xf32>
    %87 = vector.shape_cast %86 : vector<1x16x64xf32> to vector<16x64xf32>
    %88 = arith.addf %85, %87 : vector<16x64xf32>
    %89 = vector.extract_strided_slice %46 {offsets = [3, 0, 0], sizes = [1, 16, 1], strides = [1, 1, 1]} : vector<8x16x1xf32> to vector<1x16x1xf32>
    %90 = vector.shape_cast %89 : vector<1x16x1xf32> to vector<16x1xf32>
    %91 = vector.broadcast %90 : vector<16x1xf32> to vector<16x64xf32>
    %92 = arith.mulf %88, %91 : vector<16x64xf32>
    %cst_18 = arith.constant dense<0.000000e+00> : vector<64xf32>
    %93 = vector.multi_reduction <add>, %92, %cst_18 [0] : vector<16x64xf32> to vector<64xf32>
    %94 = vector.shape_cast %93 : vector<64xf32> to vector<1x64xf32>
    %95 = vector.extract_strided_slice %39 {offsets = [4, 0, 0], sizes = [1, 16, 64], strides = [1, 1, 1]} : vector<8x16x64xf32> to vector<1x16x64xf32>
    %96 = vector.shape_cast %95 : vector<1x16x64xf32> to vector<16x64xf32>
    %97 = arith.mulf %96, %88 : vector<16x64xf32>
    %98 = vector.extract_strided_slice %45 {offsets = [4, 0, 0], sizes = [1, 16, 64], strides = [1, 1, 1]} : vector<8x16x64xf32> to vector<1x16x64xf32>
    %99 = vector.shape_cast %98 : vector<1x16x64xf32> to vector<16x64xf32>
    %100 = arith.addf %97, %99 : vector<16x64xf32>
    %101 = vector.extract_strided_slice %46 {offsets = [4, 0, 0], sizes = [1, 16, 1], strides = [1, 1, 1]} : vector<8x16x1xf32> to vector<1x16x1xf32>
    %102 = vector.shape_cast %101 : vector<1x16x1xf32> to vector<16x1xf32>
    %103 = vector.broadcast %102 : vector<16x1xf32> to vector<16x64xf32>
    %104 = arith.mulf %100, %103 : vector<16x64xf32>
    %cst_19 = arith.constant dense<0.000000e+00> : vector<64xf32>
    %105 = vector.multi_reduction <add>, %104, %cst_19 [0] : vector<16x64xf32> to vector<64xf32>
    %106 = vector.shape_cast %105 : vector<64xf32> to vector<1x64xf32>
    %107 = vector.extract_strided_slice %39 {offsets = [5, 0, 0], sizes = [1, 16, 64], strides = [1, 1, 1]} : vector<8x16x64xf32> to vector<1x16x64xf32>
    %108 = vector.shape_cast %107 : vector<1x16x64xf32> to vector<16x64xf32>
    %109 = arith.mulf %108, %100 : vector<16x64xf32>
    %110 = vector.extract_strided_slice %45 {offsets = [5, 0, 0], sizes = [1, 16, 64], strides = [1, 1, 1]} : vector<8x16x64xf32> to vector<1x16x64xf32>
    %111 = vector.shape_cast %110 : vector<1x16x64xf32> to vector<16x64xf32>
    %112 = arith.addf %109, %111 : vector<16x64xf32>
    %113 = vector.extract_strided_slice %46 {offsets = [5, 0, 0], sizes = [1, 16, 1], strides = [1, 1, 1]} : vector<8x16x1xf32> to vector<1x16x1xf32>
    %114 = vector.shape_cast %113 : vector<1x16x1xf32> to vector<16x1xf32>
    %115 = vector.broadcast %114 : vector<16x1xf32> to vector<16x64xf32>
    %116 = arith.mulf %112, %115 : vector<16x64xf32>
    %cst_20 = arith.constant dense<0.000000e+00> : vector<64xf32>
    %117 = vector.multi_reduction <add>, %116, %cst_20 [0] : vector<16x64xf32> to vector<64xf32>
    %118 = vector.shape_cast %117 : vector<64xf32> to vector<1x64xf32>
    %119 = vector.extract_strided_slice %39 {offsets = [6, 0, 0], sizes = [1, 16, 64], strides = [1, 1, 1]} : vector<8x16x64xf32> to vector<1x16x64xf32>
    %120 = vector.shape_cast %119 : vector<1x16x64xf32> to vector<16x64xf32>
    %121 = arith.mulf %120, %112 : vector<16x64xf32>
    %122 = vector.extract_strided_slice %45 {offsets = [6, 0, 0], sizes = [1, 16, 64], strides = [1, 1, 1]} : vector<8x16x64xf32> to vector<1x16x64xf32>
    %123 = vector.shape_cast %122 : vector<1x16x64xf32> to vector<16x64xf32>
    %124 = arith.addf %121, %123 : vector<16x64xf32>
    %125 = vector.extract_strided_slice %46 {offsets = [6, 0, 0], sizes = [1, 16, 1], strides = [1, 1, 1]} : vector<8x16x1xf32> to vector<1x16x1xf32>
    %126 = vector.shape_cast %125 : vector<1x16x1xf32> to vector<16x1xf32>
    %127 = vector.broadcast %126 : vector<16x1xf32> to vector<16x64xf32>
    %128 = arith.mulf %124, %127 : vector<16x64xf32>
    %cst_21 = arith.constant dense<0.000000e+00> : vector<64xf32>
    %129 = vector.multi_reduction <add>, %128, %cst_21 [0] : vector<16x64xf32> to vector<64xf32>
    %130 = vector.shape_cast %129 : vector<64xf32> to vector<1x64xf32>
    %131 = vector.extract_strided_slice %39 {offsets = [7, 0, 0], sizes = [1, 16, 64], strides = [1, 1, 1]} : vector<8x16x64xf32> to vector<1x16x64xf32>
    %132 = vector.shape_cast %131 : vector<1x16x64xf32> to vector<16x64xf32>
    %133 = arith.mulf %132, %124 : vector<16x64xf32>
    %134 = vector.extract_strided_slice %45 {offsets = [7, 0, 0], sizes = [1, 16, 64], strides = [1, 1, 1]} : vector<8x16x64xf32> to vector<1x16x64xf32>
    %135 = vector.shape_cast %134 : vector<1x16x64xf32> to vector<16x64xf32>
    %136 = arith.addf %133, %135 : vector<16x64xf32>
    %137 = vector.extract_strided_slice %46 {offsets = [7, 0, 0], sizes = [1, 16, 1], strides = [1, 1, 1]} : vector<8x16x1xf32> to vector<1x16x1xf32>
    %138 = vector.shape_cast %137 : vector<1x16x1xf32> to vector<16x1xf32>
    %139 = vector.broadcast %138 : vector<16x1xf32> to vector<16x64xf32>
    %140 = arith.mulf %136, %139 : vector<16x64xf32>
    %cst_22 = arith.constant dense<0.000000e+00> : vector<64xf32>
    %141 = vector.multi_reduction <add>, %140, %cst_22 [0] : vector<16x64xf32> to vector<64xf32>
    %142 = vector.shape_cast %141 : vector<64xf32> to vector<1x64xf32>
    %143 = tpu.concatenate %58, %70, %82, %94, %106, %118, %130, %142 in 0 : vector<1x64xf32>, vector<1x64xf32>, vector<1x64xf32>, vector<1x64xf32>, vector<1x64xf32>, vector<1x64xf32>, vector<1x64xf32>, vector<1x64xf32> -> vector<8x64xf32>
    %144 = vector.broadcast %1 : vector<1x64xf32> to vector<8x64xf32>
    %145 = arith.mulf %7, %144 : vector<8x64xf32>
    %146 = arith.addf %143, %145 : vector<8x64xf32>
    %147 = arith.negf %27 : vector<8x64xf32>
    %148 = math.exp %147 : vector<8x64xf32>
    %cst_23 = arith.constant 1.000000e+00 : f32
    %149 = vector.broadcast %cst_23 : f32 to vector<8x64xf32>
    %150 = arith.addf %149, %148 : vector<8x64xf32>
    %151 = arith.divf %149, %150 : vector<8x64xf32>
    %152 = arith.mulf %27, %151 : vector<8x64xf32>
    %153 = arith.mulf %146, %152 : vector<8x64xf32>
    %c0_24 = arith.constant 0 : index
    %154 = arith.index_cast %4 : i32 to index
    %c0_25 = arith.constant 0 : index
    %155 = vector.load %arg9[%c0_24, %154, %c0_25] : memref<1x8x64xf32, #tpu.memory_space<vmem>>, vector<1x8x64xf32>
    %156 = vector.shape_cast %155 : vector<1x8x64xf32> to vector<8x64xf32>
    %157 = vector.shape_cast %153 : vector<8x64xf32> to vector<1x8x64xf32>
    tpu.vector_store %arg9[%c0_24, %154, %c0_25], %157 {strides = array<i32>} : memref<1x8x64xf32, #tpu.memory_space<vmem>>, vector<1x8x64xf32>,
    %c1_i32 = arith.constant 1 : i32
    return
  }
  func.func @transform_0(%arg0: i32, %arg1: i32) -> (i32, i32, i32) {
    %c0_i32 = arith.constant 0 : i32
    %c0_i32_0 = arith.constant 0 : i32
    return %arg0, %c0_i32, %arg1 : i32, i32, i32
  }
  func.func @transform_1(%arg0: i32, %arg1: i32) -> (i32, i32, i32) {
    %c0_i32 = arith.constant 0 : i32
    %c0_i32_0 = arith.constant 0 : i32
    return %arg0, %c0_i32, %arg1 : i32, i32, i32
  }
  func.func @transform_2(%arg0: i32, %arg1: i32) -> (i32, i32, i32) {
    %c0_i32 = arith.constant 0 : i32
    %c0_i32_0 = arith.constant 0 : i32
    %c0_i32_1 = arith.constant 0 : i32
    return %arg0, %c0_i32, %c0_i32_0 : i32, i32, i32
  }
  func.func @transform_3(%arg0: i32, %arg1: i32) -> (i32, i32, i32) {
    %c0_i32 = arith.constant 0 : i32
    %c0_i32_0 = arith.constant 0 : i32
    %c0_i32_1 = arith.constant 0 : i32
    return %arg0, %c0_i32, %c0_i32_0 : i32, i32, i32
  }
  func.func @transform_4(%arg0: i32, %arg1: i32) -> (i32, i32, i32) {
    %c0_i32 = arith.constant 0 : i32
    %c0_i32_0 = arith.constant 0 : i32
    return %arg0, %c0_i32, %arg1 : i32, i32, i32
  }
  func.func @transform_5(%arg0: i32, %arg1: i32) -> (i32, i32) {
    %c0_i32 = arith.constant 0 : i32
    %c0_i32_0 = arith.constant 0 : i32
    return %c0_i32, %arg1 : i32, i32
  }
  func.func @transform_6(%arg0: i32, %arg1: i32) -> (i32, i32) {
    %c0_i32 = arith.constant 0 : i32
    %c0_i32_0 = arith.constant 0 : i32
    return %c0_i32, %arg1 : i32, i32
  }
  func.func @transform_7(%arg0: i32, %arg1: i32) -> (i32, i32, i32) {
    %c0_i32 = arith.constant 0 : i32
    %c0_i32_0 = arith.constant 0 : i32
    return %arg0, %c0_i32, %arg1 : i32, i32, i32
  }
}

module attributes {stable_mosaic.version = 11 : i64} {
  func.func @_rmsnorm_kernel(%arg0: i32, %arg1: memref<16x32xf32, #tpu.memory_space<vmem>>, %arg2: memref<1x32xf32, #tpu.memory_space<vmem>>, %arg3: memref<16x32xf32, #tpu.memory_space<vmem>>) attributes {dimension_semantics = [#tpu.dimension_semantics<parallel>], iteration_bounds = array<i64: 1>, scalar_prefetch = 0 : i64, scratch_operands = 0 : i64, tpu.core_type = #tpu.core_type<tc>, window_params = [{transform_indices = @transform_0, window_bounds = array<i64: 16, 32>}, {pipeline_mode = #tpu.pipeline_mode<synchronous>, transform_indices = @transform_1, window_bounds = array<i64: 1, 32>}, {transform_indices = @transform_2, window_bounds = array<i64: 16, 32>}]} {
    %c0 = arith.constant 0 : index
    %c0_0 = arith.constant 0 : index
    %0 = vector.load %arg1[%c0, %c0_0] : memref<16x32xf32, #tpu.memory_space<vmem>>, vector<16x32xf32>
    %1 = arith.mulf %0, %0 : vector<16x32xf32>
    %cst = arith.constant dense<0.000000e+00> : vector<16xf32>
    %2 = vector.multi_reduction <add>, %1, %cst [1] : vector<16x32xf32> to vector<16xf32>
    %3 = vector.shape_cast %2 : vector<16xf32> to vector<16x1xf32>
    %cst_1 = arith.constant 3.200000e+01 : f32
    %4 = vector.broadcast %cst_1 : f32 to vector<16x1xf32>
    %5 = arith.divf %3, %4 : vector<16x1xf32>
    %cst_2 = arith.constant 9.99999974E-6 : f32
    %6 = vector.broadcast %cst_2 : f32 to vector<16x1xf32>
    %7 = arith.addf %5, %6 : vector<16x1xf32>
    %8 = math.rsqrt %7 : vector<16x1xf32>
    %9 = vector.broadcast %8 : vector<16x1xf32> to vector<16x32xf32>
    %10 = arith.mulf %0, %9 : vector<16x32xf32>
    %c0_3 = arith.constant 0 : index
    %c0_4 = arith.constant 0 : index
    %11 = vector.load %arg2[%c0_3, %c0_4] : memref<1x32xf32, #tpu.memory_space<vmem>>, vector<1x32xf32>
    %12 = vector.broadcast %11 : vector<1x32xf32> to vector<16x32xf32>
    %13 = arith.mulf %10, %12 : vector<16x32xf32>
    %c0_5 = arith.constant 0 : index
    %c0_6 = arith.constant 0 : index
    %14 = vector.load %arg3[%c0_5, %c0_6] : memref<16x32xf32, #tpu.memory_space<vmem>>, vector<16x32xf32>
    tpu.vector_store %arg3[%c0_5, %c0_6], %13 {strides = array<i32>} : memref<16x32xf32, #tpu.memory_space<vmem>>, vector<16x32xf32>,
    return
  }
  func.func @transform_0(%arg0: i32) -> (i32, i32) {
    %c0_i32 = arith.constant 0 : i32
    %c0_i32_0 = arith.constant 0 : i32
    return %arg0, %c0_i32 : i32, i32
  }
  func.func @transform_1(%arg0: i32) -> (i32, i32) {
    %c0_i32 = arith.constant 0 : i32
    %c0_i32_0 = arith.constant 0 : i32
    %c0_i32_1 = arith.constant 0 : i32
    return %c0_i32, %c0_i32_0 : i32, i32
  }
  func.func @transform_2(%arg0: i32) -> (i32, i32) {
    %c0_i32 = arith.constant 0 : i32
    %c0_i32_0 = arith.constant 0 : i32
    return %arg0, %c0_i32 : i32, i32
  }
}

module attributes {stable_mosaic.version = 11 : i64} {
  func.func @_linear_kernel(%arg0: i32, %arg1: i32, %arg2: i32, %arg3: memref<16x128xf32, #tpu.memory_space<vmem>>, %arg4: memref<128x128xbf16, #tpu.memory_space<vmem>>, %arg5: memref<1x128xf32, #tpu.memory_space<vmem>>, %arg6: memref<16x128xf32, #tpu.memory_space<vmem>>, %arg7: memref<16x128xf32, #tpu.memory_space<vmem>>) attributes {dimension_semantics = [#tpu.dimension_semantics<parallel>, #tpu.dimension_semantics<parallel>, #tpu.dimension_semantics<arbitrary>], iteration_bounds = array<i64: 1, 1, 1>, scalar_prefetch = 0 : i64, scratch_operands = 1 : i64, tpu.core_type = #tpu.core_type<tc>, window_params = [{transform_indices = @transform_0, window_bounds = array<i64: 16, 128>}, {transform_indices = @transform_1, window_bounds = array<i64: 128, 128>}, {transform_indices = @transform_2, window_bounds = array<i64: 1, 128>}, {transform_indices = @transform_3, window_bounds = array<i64: 16, 128>}]} {
    %c0_i32 = arith.constant 0 : i32
    %0 = arith.cmpi eq, %arg2, %c0_i32 : i32
    %1 = arith.extui %0 : i1 to i32
    %c0_i32_0 = arith.constant 0 : i32
    %2 = arith.cmpi ne, %1, %c0_i32_0 : i32
    scf.if %2 {
      %cst_10 = arith.constant 0.000000e+00 : f32
      %13 = vector.broadcast %cst_10 : f32 to vector<16x128xf32>
      %c0_11 = arith.constant 0 : index
      %c0_12 = arith.constant 0 : index
      %14 = vector.load %arg7[%c0_11, %c0_12] : memref<16x128xf32, #tpu.memory_space<vmem>>, vector<16x128xf32>
      tpu.vector_store %arg7[%c0_11, %c0_12], %13 {strides = array<i32>} : memref<16x128xf32, #tpu.memory_space<vmem>>, vector<16x128xf32>,
    } else {
    }
    %c0 = arith.constant 0 : index
    %c0_1 = arith.constant 0 : index
    %3 = vector.load %arg7[%c0, %c0_1] : memref<16x128xf32, #tpu.memory_space<vmem>>, vector<16x128xf32>
    %c0_2 = arith.constant 0 : index
    %c0_3 = arith.constant 0 : index
    %4 = vector.load %arg3[%c0_2, %c0_3] : memref<16x128xf32, #tpu.memory_space<vmem>>, vector<16x128xf32>
    %5 = arith.truncf %4 : vector<16x128xf32> to vector<16x128xbf16>
    %c0_4 = arith.constant 0 : index
    %c0_5 = arith.constant 0 : index
    %6 = vector.load %arg4[%c0_4, %c0_5] : memref<128x128xbf16, #tpu.memory_space<vmem>>, vector<128x128xbf16>
    %cst = arith.constant dense<0.000000e+00> : vector<16x128xf32>
    %7 = tpu.matmul %5, %6, %cst {dimension_numbers = #tpu.dot_dimension_numbers<[1], [0], [0], [1], [0, 0, 1, 1], [], []>} : vector<16x128xbf16>, vector<128x128xbf16>, vector<16x128xf32> -> vector<16x128xf32>
    %8 = arith.addf %3, %7 : vector<16x128xf32>
    %c0_6 = arith.constant 0 : index
    %c0_7 = arith.constant 0 : index
    %9 = vector.load %arg7[%c0_6, %c0_7] : memref<16x128xf32, #tpu.memory_space<vmem>>, vector<16x128xf32>
    tpu.vector_store %arg7[%c0_6, %c0_7], %8 {strides = array<i32>} : memref<16x128xf32, #tpu.memory_space<vmem>>, vector<16x128xf32>,
    %c0_i32_8 = arith.constant 0 : i32
    %10 = arith.cmpi eq, %arg2, %c0_i32_8 : i32
    %11 = arith.extui %10 : i1 to i32
    %c0_i32_9 = arith.constant 0 : i32
    %12 = arith.cmpi ne, %11, %c0_i32_9 : i32
    scf.if %12 {
      %c0_10 = arith.constant 0 : index
      %c0_11 = arith.constant 0 : index
      %13 = vector.load %arg7[%c0_10, %c0_11] : memref<16x128xf32, #tpu.memory_space<vmem>>, vector<16x128xf32>
      %c0_12 = arith.constant 0 : index
      %c0_13 = arith.constant 0 : index
      %14 = vector.load %arg5[%c0_12, %c0_13] : memref<1x128xf32, #tpu.memory_space<vmem>>, vector<1x128xf32>
      %15 = vector.broadcast %14 : vector<1x128xf32> to vector<16x128xf32>
      %16 = arith.addf %13, %15 : vector<16x128xf32>
      %c0_14 = arith.constant 0 : index
      %c0_15 = arith.constant 0 : index
      %17 = vector.load %arg6[%c0_14, %c0_15] : memref<16x128xf32, #tpu.memory_space<vmem>>, vector<16x128xf32>
      tpu.vector_store %arg6[%c0_14, %c0_15], %16 {strides = array<i32>} : memref<16x128xf32, #tpu.memory_space<vmem>>, vector<16x128xf32>,
    } else {
    }
    return
  }
  func.func @transform_0(%arg0: i32, %arg1: i32, %arg2: i32) -> (i32, i32) {
    %c0_i32 = arith.constant 0 : i32
    return %arg0, %arg2 : i32, i32
  }
  func.func @transform_1(%arg0: i32, %arg1: i32, %arg2: i32) -> (i32, i32) {
    %c0_i32 = arith.constant 0 : i32
    return %arg2, %arg1 : i32, i32
  }
  func.func @transform_2(%arg0: i32, %arg1: i32, %arg2: i32) -> (i32, i32) {
    %c0_i32 = arith.constant 0 : i32
    %c0_i32_0 = arith.constant 0 : i32
    return %c0_i32, %arg1 : i32, i32
  }
  func.func @transform_3(%arg0: i32, %arg1: i32, %arg2: i32) -> (i32, i32) {
    %c0_i32 = arith.constant 0 : i32
    return %arg0, %arg1 : i32, i32
  }
}

module attributes {stable_mosaic.version = 11 : i64} {
  func.func @_linear_res_kernel(%arg0: i32, %arg1: i32, %arg2: i32, %arg3: memref<16x128xf32, #tpu.memory_space<vmem>>, %arg4: memref<128x128xbf16, #tpu.memory_space<vmem>>, %arg5: memref<1x128xf32, #tpu.memory_space<vmem>>, %arg6: memref<16x128xf32, #tpu.memory_space<vmem>>, %arg7: memref<16x128xf32, #tpu.memory_space<vmem>>, %arg8: memref<16x128xf32, #tpu.memory_space<vmem>>) attributes {dimension_semantics = [#tpu.dimension_semantics<parallel>, #tpu.dimension_semantics<parallel>, #tpu.dimension_semantics<arbitrary>], iteration_bounds = array<i64: 1, 1, 1>, scalar_prefetch = 0 : i64, scratch_operands = 1 : i64, tpu.core_type = #tpu.core_type<tc>, window_params = [{transform_indices = @transform_0, window_bounds = array<i64: 16, 128>}, {transform_indices = @transform_1, window_bounds = array<i64: 128, 128>}, {transform_indices = @transform_2, window_bounds = array<i64: 1, 128>}, {transform_indices = @transform_3, window_bounds = array<i64: 16, 128>}, {transform_indices = @transform_4, window_bounds = array<i64: 16, 128>}]} {
    %c0_i32 = arith.constant 0 : i32
    %0 = arith.cmpi eq, %arg2, %c0_i32 : i32
    %1 = arith.extui %0 : i1 to i32
    %c0_i32_0 = arith.constant 0 : i32
    %2 = arith.cmpi ne, %1, %c0_i32_0 : i32
    scf.if %2 {
      %cst_10 = arith.constant 0.000000e+00 : f32
      %13 = vector.broadcast %cst_10 : f32 to vector<16x128xf32>
      %c0_11 = arith.constant 0 : index
      %c0_12 = arith.constant 0 : index
      %14 = vector.load %arg8[%c0_11, %c0_12] : memref<16x128xf32, #tpu.memory_space<vmem>>, vector<16x128xf32>
      tpu.vector_store %arg8[%c0_11, %c0_12], %13 {strides = array<i32>} : memref<16x128xf32, #tpu.memory_space<vmem>>, vector<16x128xf32>,
    } else {
    }
    %c0 = arith.constant 0 : index
    %c0_1 = arith.constant 0 : index
    %3 = vector.load %arg8[%c0, %c0_1] : memref<16x128xf32, #tpu.memory_space<vmem>>, vector<16x128xf32>
    %c0_2 = arith.constant 0 : index
    %c0_3 = arith.constant 0 : index
    %4 = vector.load %arg3[%c0_2, %c0_3] : memref<16x128xf32, #tpu.memory_space<vmem>>, vector<16x128xf32>
    %5 = arith.truncf %4 : vector<16x128xf32> to vector<16x128xbf16>
    %c0_4 = arith.constant 0 : index
    %c0_5 = arith.constant 0 : index
    %6 = vector.load %arg4[%c0_4, %c0_5] : memref<128x128xbf16, #tpu.memory_space<vmem>>, vector<128x128xbf16>
    %cst = arith.constant dense<0.000000e+00> : vector<16x128xf32>
    %7 = tpu.matmul %5, %6, %cst {dimension_numbers = #tpu.dot_dimension_numbers<[1], [0], [0], [1], [0, 0, 1, 1], [], []>} : vector<16x128xbf16>, vector<128x128xbf16>, vector<16x128xf32> -> vector<16x128xf32>
    %8 = arith.addf %3, %7 : vector<16x128xf32>
    %c0_6 = arith.constant 0 : index
    %c0_7 = arith.constant 0 : index
    %9 = vector.load %arg8[%c0_6, %c0_7] : memref<16x128xf32, #tpu.memory_space<vmem>>, vector<16x128xf32>
    tpu.vector_store %arg8[%c0_6, %c0_7], %8 {strides = array<i32>} : memref<16x128xf32, #tpu.memory_space<vmem>>, vector<16x128xf32>,
    %c0_i32_8 = arith.constant 0 : i32
    %10 = arith.cmpi eq, %arg2, %c0_i32_8 : i32
    %11 = arith.extui %10 : i1 to i32
    %c0_i32_9 = arith.constant 0 : i32
    %12 = arith.cmpi ne, %11, %c0_i32_9 : i32
    scf.if %12 {
      %c0_10 = arith.constant 0 : index
      %c0_11 = arith.constant 0 : index
      %13 = vector.load %arg8[%c0_10, %c0_11] : memref<16x128xf32, #tpu.memory_space<vmem>>, vector<16x128xf32>
      %c0_12 = arith.constant 0 : index
      %c0_13 = arith.constant 0 : index
      %14 = vector.load %arg5[%c0_12, %c0_13] : memref<1x128xf32, #tpu.memory_space<vmem>>, vector<1x128xf32>
      %15 = vector.broadcast %14 : vector<1x128xf32> to vector<16x128xf32>
      %16 = arith.addf %13, %15 : vector<16x128xf32>
      %c0_14 = arith.constant 0 : index
      %c0_15 = arith.constant 0 : index
      %17 = vector.load %arg6[%c0_14, %c0_15] : memref<16x128xf32, #tpu.memory_space<vmem>>, vector<16x128xf32>
      %18 = arith.addf %16, %17 : vector<16x128xf32>
      %c0_16 = arith.constant 0 : index
      %c0_17 = arith.constant 0 : index
      %19 = vector.load %arg7[%c0_16, %c0_17] : memref<16x128xf32, #tpu.memory_space<vmem>>, vector<16x128xf32>
      tpu.vector_store %arg7[%c0_16, %c0_17], %18 {strides = array<i32>} : memref<16x128xf32, #tpu.memory_space<vmem>>, vector<16x128xf32>,
    } else {
    }
    return
  }
  func.func @transform_0(%arg0: i32, %arg1: i32, %arg2: i32) -> (i32, i32) {
    %c0_i32 = arith.constant 0 : i32
    return %arg0, %arg2 : i32, i32
  }
  func.func @transform_1(%arg0: i32, %arg1: i32, %arg2: i32) -> (i32, i32) {
    %c0_i32 = arith.constant 0 : i32
    return %arg2, %arg1 : i32, i32
  }
  func.func @transform_2(%arg0: i32, %arg1: i32, %arg2: i32) -> (i32, i32) {
    %c0_i32 = arith.constant 0 : i32
    %c0_i32_0 = arith.constant 0 : i32
    return %c0_i32, %arg1 : i32, i32
  }
  func.func @transform_3(%arg0: i32, %arg1: i32, %arg2: i32) -> (i32, i32) {
    %c0_i32 = arith.constant 0 : i32
    return %arg0, %arg1 : i32, i32
  }
  func.func @transform_4(%arg0: i32, %arg1: i32, %arg2: i32) -> (i32, i32) {
    %c0_i32 = arith.constant 0 : i32
    return %arg0, %arg1 : i32, i32
  }
}

</mosaic_0001>

<bundles_post_ra>
// kernel: _lambda_.16
= control target key start
LH: loop header
LB: loop body
LE: loop exit
PB: predicated region body
PF: predicated region fallthrough
CT: control target
= control target key end

     0   :  { %vm15_vm0 = vcmask 261120   ;;  %s85_s0 = inlined_call_operand.vmem [shape: f32[16,32], index: 0, kind: input, shape index: {}]   ;;  %s86_s1 = inlined_call_operand.vmem [shape: f32[1,32], index: 1, kind: input, shape index: {}]   ;;  %s87_s2 = inlined_call_operand.vmem [shape: f32[16,32], index: 2, kind: output, shape index: {}]  }
   0x1   :  { %v11_v0 = vld [vmem:[%s85_s0] sm:$0xff]  ;;  %v12_v1 = vld [vmem:[%s85_s0 + $0x8] sm:$0xff] }
   0x2   :  { %v13_v2 = vmul.f32 %v11_v0, %v11_v0  ;;  %v14_v3 = vmul.f32 %v12_v1, %v12_v1  ;;  %v46_v13 = vld [vmem:[%s86_s1] ss:$0 sm:$0xff] }
   0x4   :  { %v16_v4 = vsel %vm15_vm0, %v13_v2, 0.0  ;;  %v19_v5 = vsel %vm15_vm0, %v14_v3, 0.0 }
   0x5   :  { %17 = vadd.xlane.f32.xlu0 %v16_v4 }
   0x9   :  { %20 = vadd.xlane.f32.xlu0 %v19_v5 }
  0x92   :  { %v18_v6 = vpop.xlane.xlu0 %17 }
  0x93   :  { %v23_v7 = vmul.f32 0.03125, %v18_v6 }
  0x95   :  { %v25_v8 = vadd.f32 1e-05, %v23_v7 }
  0x96   :  { %v21_v9 = vpop.xlane.xlu0 %20 }
  0x97   :  { %47 = vrsqrt.f32 %v25_v8  ;;  %v24_v10 = vmul.f32 0.03125, %v21_v9 }
  0x99   :  { %v26_v11 = vadd.f32 1e-05, %v24_v10 }
  0x9b   :  { %49 = vrsqrt.f32 %v26_v11 }
  0xa1   :  { %v48_v12 = vpop.eup %47 }
  0xa2   :  { %v29_v14 = vmul.f32 %v48_v12, %v11_v0 }
  0xa4   :  { %v38_v15 = vmul.f32 %v46_v13, %v29_v14 }
  0xa5   :  { %v50_v16 = vpop.eup %49 }
  0xa6   :  { %40 = vst.msk [vmem:[%s87_s2] sm:$0xff] %vm15_vm0, %v38_v15  ;;  %v30_v17 = vmul.f32 %v50_v16, %v12_v1 }
  0xa8   :  { %v39_v18 = vmul.f32 %v46_v13, %v30_v17 }
  0xaa   :  { %41 = vst.msk [vmem:[%s87_s2 + $0x8] sm:$0xff] %vm15_vm0, %v39_v18 }

// kernel: _lambda_.18
= control target key start
LH: loop header
LB: loop body
LE: loop exit
PB: predicated region body
PF: predicated region fallthrough
CT: control target
= control target key end

     0   :  { %s468_s12 = smov 0   ;;  %s470_s13 = smov 0   ;;  %s514_s0 = inlined_call_operand.vmem [shape: f32[2,8,64], index: 0, kind: input, shape index: {}]   ;;  %s515_s1 = inlined_call_operand.vmem [shape: f32[4,64], index: 1, kind: input, shape index: {}]   ;;  %s516_s2 = inlined_call_operand.vmem [shape: f32[1,64], index: 2, kind: input, shape index: {}]   ;;  %s517_s3 = inlined_call_operand.vmem [shape: f32[2,8,64], index: 3, kind: output, shape index: {}]  }
   0x1   :  { %s472_s14 = smov 0  }
   0x2 LB: > { %s25_s15 = sadd.s32 1, %s442_s13  ;;  %p389_p0 = scmp.ge.s32.totalorder %s446_s14, 1  ;;  %s446_s14 = sphi %s472_s14, %s13_s14   ;;  %s442_s13 = sphi %s470_s13, %s519_s13   ;;  %s438_s12 = sphi %s468_s12, %s518_s12  }
   0x3   : > { %p27_p1 = scmp.ge.s32.totalorder %s25_s15, 2  ;;  %p172_p2 = scmp.lt.s32.totalorder %s446_s14, 3 }
   0x5   : > { %s521_s15 = smov (%p27_p1, %s25_s15), 0  ;;  %p173_p3 = pnand %p389_p0, %p172_p2 }
   0x6   : > { %p207_p4 = scmp.lt.s32.totalorder (!%p173_p3), %s438_s12, 1  ;;  %v230_v0 = vlaneseq (!%p173_p3)  ;;  %v229_v2 = vld [vmem:[%s515_s1] sm:$0xf] (!%p173_p3)  ;;  %vm279_vm3 = vcmask (!%p173_p3), 523264  }
   0x7   : > { %176 = sbr.rel (%p173_p3) target bundleno = 60 (0x3c), region = 32  ;;  %v392_v24 = vld [vmem:[%s516_s2] ss:$0 sm:$0xff] (!%p173_p3) }
   0x8   : > { %v231_v1 = vshrl.u32 (!%p173_p3), %v230_v0, 7 }
   0xa   : > { %v232_v3 = vsub.s32 (!%p173_p3), 3, %v231_v1  ;;  %v242_v4 = vsub.s32 (!%p173_p3), 0, %v231_v1  ;;  %vm238_vm0 = vcmp.ge.s32.totalorder (!%p173_p3), %v231_v1, 3  ;;  %v251_v5 = vsub.s32 (!%p173_p3), 1, %v231_v1 }
   0xb   : > { %v260_v6 = vsub.s32 (!%p173_p3), 2, %v231_v1  ;;  %vm247_vm1 = vcmp.ge.s32.totalorder (!%p173_p3), %v231_v1, 2  ;;  %vm256_vm2 = vcmp.ge.s32.totalorder (!%p173_p3), %v231_v1, 1 }
   0xc   : > { %v233_v8 = vrot.slane (!%p173_p3), %v229_v2, %v232_v3  ;;  %v243_v9 = vrot.slane (!%p173_p3), %v229_v2, %v242_v4  ;;  %v252_v12 = vrot.slane (!%p173_p3), %v229_v2, %v251_v5 }
   0xd   : > { %v261_v15 = vrot.slane (!%p173_p3), %v229_v2, %v260_v6 }
   0xe   : > { %s523_s12 = smov (!%p207_p4, %s438_s12), 1 }
   0xf   : > { %s390_s18 = sshll.u32 %s523_s12, 3 }
  0x10   : > { %s213_s21 = scalar_lea.vmem %s514_s0, %s390_s18  ;;  %s227_s26 = scalar_lea.vmem %s517_s3, %s390_s18 }
  0x11   : > { %v228_v7 = vld [vmem:[%s213_s21] sm:$0xff] }
  0x12   : > { %v237_v10 = vrot.slane %v228_v7, 5  ;;  %v246_v11 = vrot.slane %v228_v7, 6  ;;  %v255_v13 = vrot.slane %v228_v7, 7  ;;  %v234_v14 = vmul.f32 %v233_v8, %v228_v7 }
  0x14   : > { %v239_v16 = vsel %vm238_vm0, %v237_v10, 0.0  ;;  %v248_v17 = vsel %vm247_vm1, %v246_v11, 0.0  ;;  %v257_v18 = vsel %vm256_vm2, %v255_v13, 0.0 }
  0x15   : > { %v244_v19 = vmul.f32 %v243_v9, %v239_v16  ;;  %v253_v20 = vmul.f32 %v252_v12, %v248_v17  ;;  %v262_v22 = vmul.f32 %v261_v15, %v257_v18 }
  0x17   : > { %v245_v21 = vadd.f32 %v244_v19, %v234_v14 }
  0x19   : > { %v254_v23 = vadd.f32 %v253_v20, %v245_v21 }
  0x1b   : > { %v263_v25 = vadd.f32 %v262_v22, %v254_v23 }
  0x1d   : > { %v271_v26 = vadd.f32 %v392_v24, %v263_v25 }
  0x1f   : > { %v393_v27 = vmul.f32 -1.442695, %v271_v26 }
  0x21   : > { %420 = vpow2.f32 %v393_v27 }
  0x2b   : > { %v421_v28 = vpop.eup %420 }
  0x2c   : > { %v275_v29 = vadd.f32 1.0, %v421_v28 }
  0x2e   : > { %422 = vrcp.f32 %v275_v29 }
  0x38   : > { %v423_v30 = vpop.eup %422 }
  0x39   : > { %v278_v31 = vmul.f32 %v423_v30, %v271_v26 }
  0x3b   : > { %280 = vst.msk [vmem:[%s227_s26] sm:$0xff] %vm279_vm3, %v278_v31 }
  0x3c PF: > { %s13_s14 = sadd.s32 1, %s446_s14   ;;  %s518_s12 = smov %s442_s13 }
  0x3d   : > { %p10_p5 = scmp.ge.s32.totalorder %s13_s14, 4   ;;  %s519_s13 = smov %s521_s15 }
  0x3f   :  { %12 = sbr.rel (!%p10_p5) target bundleno = 2 (0x2), region = 68 }

// kernel: _lambda_.17
= control target key start
LH: loop header
LB: loop body
LE: loop exit
PB: predicated region body
PF: predicated region fallthrough
CT: control target
= control target key end

     0   :  { %v203_v0 = vmov 0.0   ;;  %vm204_vm0 = vmmov 0   ;;  %s264_s1 = inlined_call_operand.vmem [shape: bf16[128,128], index: 1, kind: input, shape index: {}]   ;;  %s265_s0 = inlined_call_operand.vmem [shape: f32[16,128], index: 0, kind: input, shape index: {}]   ;;  %s266_s2 = inlined_call_operand.vmem [shape: f32[1,128], index: 2, kind: input, shape index: {}]   ;;  %s267_s3 = inlined_call_operand.vmem [shape: f32[16,128], index: 3, kind: output, shape index: {}]  }
   0x1   :  { %173 = vmatprep.subr.bf16.mxu0 %v203_v0  ;;  %v195_v1 = vld [vmem:[%s264_s1] sm:$0xff]   ;;  %189 = vmatprep.mubr.msk.bf16.mxu0 %vm204_vm0, %v203_v0  ;;  %v196_v2 = vld [vmem:[%s264_s1 + $0x8] sm:$0xff]   ;;  %v197_v3 = vld [vmem:[%s264_s1 + $0x10] sm:$0xff]  }
   0x2   :  { %174 = vmatpush3.bf16.msra.mxu0 %v195_v1  ;;  %v198_v4 = vld [vmem:[%s264_s1 + $0x18] sm:$0xff]   ;;  %v199_v5 = vld [vmem:[%s264_s1 + $0x20] sm:$0xff]   ;;  %v200_v6 = vld [vmem:[%s264_s1 + $0x28] sm:$0xff]  }
   0x3   :  { %175 = vmatprep.subr.bf16.mxu0 %v203_v0  ;;  %v201_v7 = vld [vmem:[%s264_s1 + $0x30] sm:$0xff]   ;;  %v202_v8 = vld [vmem:[%s264_s1 + $0x38] sm:$0xff]   ;;  %v23_v9 = vld [vmem:[%s265_s0] sm:$0xff] }
   0x4   :  { %v24_v10 = vld [vmem:[%s265_s0 + $0x8] sm:$0xff]  ;;  %v163_v12 = vld [vmem:[%s266_s2] ss:$0 sm:$0xff] }
   0x5   :  { %v25_v11 = vpack.c.bf16 %v24_v10, %v23_v9 }
   0x6   :  { %176 = vmatpush3.bf16.msra.mxu0 %v196_v2 }
   0x7   :  { %177 = vmatprep.subr.bf16.mxu0 %v203_v0 }
   0xa   :  { %178 = vmatpush3.bf16.msra.mxu0 %v197_v3 }
   0xb   :  { %179 = vmatprep.subr.bf16.mxu0 %v203_v0 }
   0xe   :  { %180 = vmatpush3.bf16.msra.mxu0 %v198_v4 }
   0xf   :  { %181 = vmatprep.subr.bf16.mxu0 %v203_v0 }
  0x12   :  { %182 = vmatpush3.bf16.msra.mxu0 %v199_v5 }
  0x13   :  { %183 = vmatprep.subr.bf16.mxu0 %v203_v0 }
  0x16   :  { %184 = vmatpush3.bf16.msra.mxu0 %v200_v6 }
  0x17   :  { %185 = vmatprep.subr.bf16.mxu0 %v203_v0 }
  0x1a   :  { %186 = vmatpush3.bf16.msra.mxu0 %v201_v7 }
  0x1b   :  { %187 = vmatprep.subr.bf16.mxu0 %v203_v0 }
  0x1e   :  { %188 = vmatpush3.bf16.msra.mxu0 %v202_v8 }
  0x21   :  { %190 = vmatmul.mubr.bf16.vlgmr.msra.gmra.mrb[0].mxu0 %v25_v11 }
  0xf4   :  { %v124_v13 = vpop.f32.mrb[0].mxu0 }
  0xf5   :  { %v147_v14 = vadd.f32 %v163_v12, %v124_v13  ;;  %v191_v15 = vpop.f32.mrb[1].mxu0 }
  0xf6   :  { %v127_v16 = vpop.f32.mrb[2].mxu0 }
  0xf7   :  { %149 = vst [vmem:[%s267_s3] sm:$0xff] %v147_v14  ;;  %v148_v17 = vadd.f32 %v163_v12, %v127_v16  ;;  %v192_v18 = vpop.f32.mrb[3].mxu0 }
  0xf9   :  { %150 = vst [vmem:[%s267_s3 + $0x8] sm:$0xff] %v148_v17 }

// kernel: _lambda_.21
= control target key start
LH: loop header
LB: loop body
LE: loop exit
PB: predicated region body
PF: predicated region fallthrough
CT: control target
= control target key end

     0   :  { %s1328_s24 = smov 0   ;;  %s1330_s25 = smov 0   ;;  %s1583_s0 = inlined_call_operand.vmem [shape: f32[2,8,64], index: 0, kind: input, shape index: {}]   ;;  %s1584_s1 = inlined_call_operand.vmem [shape: f32[2,8,64], index: 1, kind: input, shape index: {}]   ;;  %s1585_s2 = inlined_call_operand.vmem [shape: f32[2,8,16], index: 2, kind: input, shape index: {}]   ;;  %s1586_s3 = inlined_call_operand.vmem [shape: f32[2,8,16], index: 3, kind: input, shape index: {}]   ;;  %s1587_s4 = inlined_call_operand.vmem [shape: f32[2,8,64], index: 4, kind: input, shape index: {}]   ;;  %s1588_s5 = inlined_call_operand.vmem [shape: f32[16,64], index: 5, kind: input, shape index: {}]   ;;  %s1589_s6 = inlined_call_operand.vmem [shape: f32[1,64], index: 6, kind: input, shape index: {}]   ;;  %s1590_s7 = inlined_call_operand.vmem [shape: f32[2,8,64], index: 7, kind: output, shape index: {}]  }
   0x1   :  { %s1332_s26 = smov 0  }
   0x2 LB: > { %s29_s27 = sadd.s32 1, %s1281_s25  ;;  %p1187_p0 = scmp.ge.s32.totalorder %s1285_s26, 1  ;;  %s1285_s26 = sphi %s1332_s26, %s17_s26   ;;  %s1281_s25 = sphi %s1330_s25, %s1592_s25   ;;  %s1277_s24 = sphi %s1328_s24, %s1591_s24  }
   0x3   : > { %p31_p1 = scmp.ge.s32.totalorder %s29_s27, 2  ;;  %p318_p2 = scmp.lt.s32.totalorder %s1285_s26, 3 }
   0x5   : > { %s1594_s27 = smov (%p31_p1, %s29_s27), 0  ;;  %p319_p3 = pnand %p1187_p0, %p318_p2 }
   0x6   : > { %p383_p4 = scmp.lt.s32.totalorder (!%p319_p3), %s1277_s24, 1  ;;  %v457_v0 = vlaneseq (!%p319_p3)  ;;  %v1287_v26 = vmov (!%p319_p3), 1966171168   ;;  %vm879_vm2 = vcmask (!%p319_p3), 523264   ;;  %vm994_vm3 = vcmask (!%p319_p3), 1040384  }
   0x7   : > { %322 = sbr.rel (%p319_p3) target bundleno = 218 (0xda), region = 48  ;;  %v455_v27 = vunpack.c.l.s4 (!%p319_p3), %v1287_v26  ;;  %vm996_vm4 = vcmask (!%p319_p3), 1041408   ;;  %vm998_vm5 = vcmask (!%p319_p3), 1042432   ;;  %vm1000_vm6 = vcmask (!%p319_p3), 1043456  }
   0x8   : > { %v1346_v1 = vshrl.u32 (!%p319_p3), %v457_v0, 7  ;;  %vm1002_vm7 = vcmask (!%p319_p3), 1044480   ;;  %vm1004_vm8 = vcmask (!%p319_p3), 1045504   ;;  %vm1006_vm9 = vcmask (!%p319_p3), 1046528  }
   0x9   : > { %v456_v31 = vunpack.c.0.s8 (!%p319_p3), %v455_v27 }
   0xa   : > { %v1351_v2 = vsub.s32 (!%p319_p3), 0, %v1346_v1  ;;  %v654_v3 = vsub.s32 (!%p319_p3), 1, %v1346_v1  ;;  %v665_v8 = vsub.s32 (!%p319_p3), 2, %v1346_v1  ;;  %v676_v11 = vsub.s32 (!%p319_p3), 3, %v1346_v1 }
   0xb   : > { %v687_v15 = vsub.s32 (!%p319_p3), 4, %v1346_v1  ;;  %v698_v17 = vsub.s32 (!%p319_p3), 5, %v1346_v1  ;;  %v709_v19 = vsub.s32 (!%p319_p3), 6, %v1346_v1  ;;  %v720_v36 = vsub.s32 (!%p319_p3), 7, %v1346_v1 }
   0xc   : > { %v459_v38 = vsub.s32 (!%p319_p3), %v456_v31, %v1346_v1  ;;  %v426_v31 = vld [vmem:[%s1588_s5] sm:$0xff] (!%p319_p3)  ;;  %v1461_v1 = vld [vmem:[%s1588_s5 + $0x8] sm:$0xff] (!%p319_p3) }
   0xe   : > { %s1596_s24 = smov (!%p383_p4, %s1277_s24), 1 }
   0xf   : > { %s1348_s28 = sshll.u32 %s1596_s24, 3 }
  0x10   : > { %s400_s8 = scalar_lea.vmem %s1585_s2, %s1348_s28  ;;  %s396_s11 = scalar_lea.vmem %s1584_s1, %s1348_s28 }
  0x11   : > { %v1358_v4 = vld [vmem:[%s400_s8] sm:$0xff]  ;;  %s404_s14 = scalar_lea.vmem %s1586_s3, %s1348_s28  ;;  %s389_s17 = scalar_lea.vmem %s1583_s0, %s1348_s28 }
  0x12   : > { %v655_v5 = vrot.slane %v1358_v4, %v654_v3  ;;  %v644_v6 = vrot.slane %v1358_v4, %v1351_v2  ;;  %v1367_v7 = vld [vmem:[%s396_s11] sm:$0xff]  ;;  %v666_v10 = vrot.slane %v1358_v4, %v665_v8  ;;  %v677_v14 = vrot.slane %v1358_v4, %v676_v11  ;;  %s411_s24 = scalar_lea.vmem %s1587_s4, %s1348_s28  ;;  %s425_s10 = scalar_lea.vmem %s1590_s7, %s1348_s28 }
  0x13   : > { %v434_v9 = vand.u32 2147483647, %v1367_v7  ;;  %v688_v16 = vrot.slane %v1358_v4, %v687_v15  ;;  %v699_v18 = vrot.slane %v1358_v4, %v698_v17  ;;  %v710_v22 = vrot.slane %v1358_v4, %v709_v19  ;;  %v1388_v23 = vld [vmem:[%s404_s14] sm:$0xff] }
  0x14   : > { %657 = vbcast.lane.b32.xlu1 %v655_v5, 256  ;;  %646 = vbcast.lane.b32.xlu0 %v644_v6, 256  ;;  %v788_v25 = vrot.slane %v1388_v23, %v1351_v2  ;;  %v799_v30 = vrot.slane %v1388_v23, %v654_v3  ;;  %v431_v34 = vmax.f32 %v1367_v7, 0.0  ;;  %v810_v35 = vrot.slane %v1388_v23, %v665_v8  ;;  %v1403_v40 = vld [vmem:[%s389_s17] sm:$0xff] }
  0x15   : > { %v435_v12 = vsub.f32 0.0, %v434_v9  ;;  %vm432_vm1 = vcmp.ne.f32.partialorder %v1367_v7, %v1367_v7  ;;  %v721_v42 = vrot.slane %v1358_v4, %v720_v36  ;;  %v821_v47 = vrot.slane %v1388_v23, %v676_v11 }
  0x16   : > { %v832_v53 = vrot.slane %v1388_v23, %v687_v15  ;;  %v865_v26 = vrot.slane %v1388_v23, %v720_v36 }
  0x17   : > { %v436_v13 = vmul.f32 1.442695, %v435_v12  ;;  %v843_v12 = vrot.slane %v1388_v23, %v698_v17  ;;  %v854_v17 = vrot.slane %v1388_v23, %v709_v19 }
  0x18   : > { %661 = vbcast.lane.b32.xlu1 %v655_v5, 264  ;;  %650 = vbcast.lane.b32.xlu0 %v644_v6, 264 }
  0x19   : > { %1223 = vpow2.f32 %v436_v13 }
  0x1c   : > { %672 = vbcast.lane.b32.xlu1 %v666_v10, 264  ;;  %668 = vbcast.lane.b32.xlu0 %v666_v10, 256 }
  0x20   : > { %683 = vbcast.lane.b32.xlu1 %v677_v14, 264  ;;  %679 = vbcast.lane.b32.xlu0 %v677_v14, 256 }
  0x23   : > { %v1224_v20 = vpop.eup %1223 }
  0x24   : > { %694 = vbcast.lane.b32.xlu1 %v688_v16, 264  ;;  %690 = vbcast.lane.b32.xlu0 %v688_v16, 256  ;;  %v438_v21 = vadd.f32 1.0, %v1224_v20  ;;  %v441_v24 = vmul.f32 -0.5, %v1224_v20  ;;  %v444_v29 = vand.u32 2147483647, %v1224_v20 }
  0x26   : > { %1225 = vlog2.f32 %v438_v21  ;;  %v442_v28 = vadd.f32 1.0, %v441_v24  ;;  %vm445_vm0 = vcmp.lt.f32.partialorder %v444_v29, 0.0004427343 }
  0x28   : > { %705 = vbcast.lane.b32.xlu1 %v699_v18, 264  ;;  %701 = vbcast.lane.b32.xlu0 %v699_v18, 256  ;;  %v443_v32 = vmul.f32 %v1224_v20, %v442_v28 }
  0x2c   : > { %716 = vbcast.lane.b32.xlu1 %v710_v22, 264  ;;  %712 = vbcast.lane.b32.xlu0 %v710_v22, 256 }
  0x30   : > { %794 = vbcast.lane.b32.xlu1 %v788_v25, 264  ;;  %790 = vbcast.lane.b32.xlu0 %v788_v25, 256  ;;  %v1226_v33 = vpop.eup %1225 }
  0x31   : > { %v440_v37 = vmul.f32 0.6931472, %v1226_v33 }
  0x33   : > { %v446_v39 = vsel %vm445_vm0, %v443_v32, %v440_v37 }
  0x34   : > { %805 = vbcast.lane.b32.xlu1 %v799_v30, 264  ;;  %801 = vbcast.lane.b32.xlu0 %v799_v30, 256  ;;  %v447_v41 = vadd.f32 %v446_v39, %v431_v34 }
  0x36   : > { %v448_v43 = vsel %vm432_vm1, %v1367_v7, %v447_v41 }
  0x37   : > { %v453_v44 = vcombine.high %v448_v43, %v448_v43  ;;  %v590_v45 = vmul.f32 %v448_v43, %v1403_v40  ;;  %v460_v46 = vrot.slane %v448_v43, %v459_v38 }
  0x38   : > { %816 = vbcast.lane.b32.xlu1 %v810_v35, 264  ;;  %812 = vbcast.lane.b32.xlu0 %v810_v35, 256 }
  0x39   : > { %v467_v48 = vrot.slane %v453_v44, %v459_v38  ;;  %v599_v49 = vrot.slane %v590_v45, %v459_v38  ;;  %v592_v50 = vcombine.high %v590_v45, %v590_v45  ;;  %v468_v51 = vcombine.high %v460_v46, %v460_v46 }
  0x3a   : > { %v476_v52 = vrot.slane %v460_v46, %v459_v38 }
  0x3b   : > { %v483_v54 = vrot.slane %v467_v48, %v459_v38  ;;  %v607_v55 = vcombine.high %v599_v49, %v599_v49  ;;  %v615_v56 = vrot.slane %v599_v49, %v459_v38  ;;  %v606_v57 = vrot.slane %v592_v50, %v459_v38 }
  0x3c   : > { %727 = vbcast.lane.b32.xlu1 %v721_v42, 264  ;;  %723 = vbcast.lane.b32.xlu0 %v721_v42, 256  ;;  %v490_v58 = vrot.slane %v468_v51, %v459_v38  ;;  %v498_v59 = vcombine.high %v476_v52, %v476_v52  ;;  %v505_v60 = vrot.slane %v476_v52, %v1351_v2 }
  0x3d   : > { %v629_v61 = vrot.slane %v607_v55, %v459_v38  ;;  %v1414_v62 = vrot.slane %v615_v56, %v1351_v2  ;;  %v637_v63 = vcombine.high %v615_v56, %v615_v56  ;;  %v622_v0 = vrot.slane %v606_v57, %v459_v38 }
  0x3e   : > { %v608_v3 = vcombine.high %v606_v57, %v606_v57  ;;  %v513_v4 = vrot.slane %v498_v59, %v1351_v2  ;;  %v500_v11 = vcombine.high %v490_v58, %v490_v58  ;;  %v509_v14 = vrot.slane %v490_v58, %v1351_v2 }
  0x3f   : > { %v1418_v5 = vrot.slane %v629_v61, %v1351_v2  ;;  %v1421_v6 = vrot.slane %v637_v63, %v1351_v2  ;;  %v639_v7 = vcombine.high %v629_v61, %v629_v61  ;;  %v1424_v8 = vrot.slane %v622_v0, %v1351_v2 }
  0x40   : > { %827 = vbcast.lane.b32.xlu1 %v821_v47, 264  ;;  %823 = vbcast.lane.b32.xlu0 %v821_v47, 256  ;;  %v636_v9 = vrot.slane %v608_v3, %v459_v38  ;;  %v638_v10 = vcombine.high %v622_v0, %v622_v0  ;;  %v469_v18 = vcombine.high %v467_v48, %v467_v48 }
  0x41   : > { %v1430_v13 = vrot.slane %v639_v7, %v1351_v2  ;;  %v517_v21 = vrot.slane %v500_v11, %v1351_v2  ;;  %v521_v22 = vrot.slane %v483_v54, %v1351_v2  ;;  %v499_v27 = vcombine.high %v483_v54, %v483_v54 }
  0x42   : > { %v1434_v15 = vrot.slane %v636_v9, %v1351_v2  ;;  %v1437_v16 = vrot.slane %v638_v10, %v1351_v2  ;;  %v640_v20 = vcombine.high %v636_v9, %v636_v9  ;;  %v497_v25 = vrot.slane %v469_v18, %v459_v38 }
  0x43   : > { %v529_v29 = vrot.slane %v499_v27, %v1351_v2  ;;  %v542_v32 = vmul.f32 %v505_v60, %v426_v31  ;;  %v543_v23 = vmul.f32 %v505_v60, %v1461_v1  ;;  %v544_v34 = vmul.f32 %v509_v14, %v426_v31 }
  0x44   : > { %838 = vbcast.lane.b32.xlu1 %v832_v53, 264  ;;  %834 = vbcast.lane.b32.xlu0 %v832_v53, 256  ;;  %v1445_v24 = vrot.slane %v640_v20, %v1351_v2  ;;  %v525_v28 = vrot.slane %v497_v25, %v1351_v2  ;;  %v501_v30 = vcombine.high %v497_v25, %v497_v25 }
  0x45   : > { %v558_v33 = vmul.f32 1.442695, %v542_v32  ;;  %v560_v35 = vmul.f32 1.442695, %v543_v23  ;;  %v546_v36 = vmul.f32 %v513_v4, %v426_v31  ;;  %v562_v37 = vmul.f32 1.442695, %v544_v34 }
  0x46   : > { %v1453_v19 = vrot.slane %v501_v30, %v1351_v2  ;;  %v545_v2 = vmul.f32 %v509_v14, %v1461_v1  ;;  %v547_v38 = vmul.f32 %v513_v4, %v1461_v1  ;;  %v548_v42 = vmul.f32 %v517_v21, %v426_v31 }
  0x47   : > { %1227 = vpow2.f32 %v558_v33  ;;  %v566_v39 = vmul.f32 1.442695, %v546_v36  ;;  %v549_v44 = vmul.f32 %v517_v21, %v1461_v1  ;;  %v550_v47 = vmul.f32 %v521_v22, %v426_v31 }
  0x48   : > { %849 = vbcast.lane.b32.xlu1 %v843_v12, 264  ;;  %845 = vbcast.lane.b32.xlu0 %v843_v12, 256  ;;  %1229 = vpow2.f32 %v560_v35  ;;  %v564_v41 = vmul.f32 1.442695, %v545_v2  ;;  %v568_v43 = vmul.f32 1.442695, %v547_v38  ;;  %v551_v48 = vmul.f32 %v521_v22, %v1461_v1 }
  0x49   : > { %1231 = vpow2.f32 %v562_v37  ;;  %v570_v46 = vmul.f32 1.442695, %v548_v42  ;;  %v572_v50 = vmul.f32 1.442695, %v549_v44  ;;  %v574_v54 = vmul.f32 1.442695, %v550_v47 }
  0x4a   : > { %1233 = vpow2.f32 %v566_v39  ;;  %v552_v55 = vmul.f32 %v525_v28, %v426_v31  ;;  %v576_v58 = vmul.f32 1.442695, %v551_v48  ;;  %v553_v61 = vmul.f32 %v525_v28, %v1461_v1 }
  0x4b   : > { %1235 = vpow2.f32 %v564_v41  ;;  %v554_v4 = vmul.f32 %v529_v29, %v426_v31  ;;  %v555_v21 = vmul.f32 %v529_v29, %v1461_v1 }
  0x4c   : > { %860 = vbcast.lane.b32.xlu1 %v854_v17, 264  ;;  %856 = vbcast.lane.b32.xlu0 %v854_v17, 256  ;;  %1237 = vpow2.f32 %v568_v43  ;;  %v578_v3 = vmul.f32 1.442695, %v552_v55  ;;  %v580_v20 = vmul.f32 1.442695, %v553_v61 }
  0x4d   : > { %1239 = vpow2.f32 %v570_v46  ;;  %v582_v25 = vmul.f32 1.442695, %v554_v4  ;;  %v584_v29 = vmul.f32 1.442695, %v555_v21 }
  0x4e   : > { %1241 = vpow2.f32 %v572_v50 }
  0x4f   : > { %1243 = vpow2.f32 %v574_v54 }
  0x50   : > { %871 = vbcast.lane.b32.xlu1 %v865_v26, 264  ;;  %867 = vbcast.lane.b32.xlu0 %v865_v26, 256  ;;  %1245 = vpow2.f32 %v576_v58  ;;  %v556_v26 = vmul.f32 %v1453_v19, %v426_v31  ;;  %v557_v31 = vmul.f32 %v1453_v19, %v1461_v1 }
  0x51   : > { %v1228_v45 = vpop.eup %1227  ;;  %1247 = vpow2.f32 %v578_v3 }
  0x52   : > { %v873_v49 = vmul.f32 0.0, %v1228_v45  ;;  %v1230_v51 = vpop.eup %1229  ;;  %1249 = vpow2.f32 %v580_v20  ;;  %v588_v48 = vmul.f32 1.442695, %v557_v31 }
  0x53   : > { %v1232_v57 = vpop.eup %1231  ;;  %v874_v59 = vmul.f32 0.0, %v1230_v51  ;;  %1251 = vpow2.f32 %v582_v25 }
  0x54   : > { %v1234_v7 = vpop.eup %1233  ;;  %1253 = vpow2.f32 %v584_v29 }
  0x55   : > { %v1236_v12 = vpop.eup %1235 }
  0x56   : > { %v1238_v27 = vpop.eup %1237 }
  0x57   : > { %v1240_v23 = vpop.eup %1239 }
  0x58   : > { %v1242_v2 = vpop.eup %1241 }
  0x59   : > { %v1244_v42 = vpop.eup %1243 }
  0x5a   : > { %v1246_v45 = vpop.eup %1245 }
  0x5b   : > { %v1248_v50 = vpop.eup %1247 }
  0x5c   : > { %v1250_v55 = vpop.eup %1249 }
  0x86   : > { %v658_v52 = vpop.permute.xlu1 %657  ;;  %v647_v53 = vpop.permute.xlu0 %646 }
  0x87   : > { %v769_v56 = vmul.f32 %v1414_v62, %v647_v53  ;;  %v771_v9 = vmul.f32 %v1418_v5, %v658_v52 }
  0x89   : > { %v1469_v60 = vadd.f32 %v873_v49, %v769_v56 }
  0x8a   : > { %v662_v63 = vpop.permute.xlu1 %661  ;;  %v651_v0 = vpop.permute.xlu0 %650 }
  0x8b   : > { %v770_v10 = vmul.f32 %v1414_v62, %v651_v0  ;;  %v889_v11 = vmul.f32 %v1232_v57, %v1469_v60  ;;  %v772_v62 = vmul.f32 %v1418_v5, %v662_v63  ;;  %v586_v5 = vmul.f32 1.442695, %v556_v26 }
  0x8d   : > { %v1475_v14 = vadd.f32 %v874_v59, %v770_v10  ;;  %v1477_v18 = vadd.f32 %v889_v11, %v771_v9  ;;  %1255 = vpow2.f32 %v586_v5  ;;  %v1252_v59 = vpop.eup %1251 }
  0x8e   : > { %v673_v17 = vpop.permute.xlu1 %672  ;;  %v669_v22 = vpop.permute.xlu0 %668  ;;  %1257 = vpow2.f32 %v588_v48 }
  0x8f   : > { %v773_v28 = vmul.f32 %v1421_v6, %v669_v22  ;;  %v890_v30 = vmul.f32 %v1236_v12, %v1475_v14  ;;  %v904_v32 = vmul.f32 %v1234_v7, %v1477_v18  ;;  %v774_v37 = vmul.f32 %v1421_v6, %v673_v17  ;;  %v1254_v4 = vpop.eup %1253 }
  0x91   : > { %v1485_v33 = vadd.f32 %v890_v30, %v772_v62  ;;  %v1487_v34 = vadd.f32 %v904_v32, %v773_v28 }
  0x92   : > { %v684_v35 = vpop.permute.xlu1 %683  ;;  %v680_v36 = vpop.permute.xlu0 %679 }
  0x93   : > { %v775_v38 = vmul.f32 %v1430_v13, %v680_v36  ;;  %v905_v39 = vmul.f32 %v1238_v27, %v1485_v33  ;;  %v919_v41 = vmul.f32 %v1240_v23, %v1487_v34  ;;  %v776_v19 = vmul.f32 %v1430_v13, %v684_v35 }
  0x95   : > { %v907_v43 = vadd.f32 %v905_v39, %v774_v37  ;;  %v1495_v44 = vadd.f32 %v919_v41, %v775_v38 }
  0x96   : > { %v695_v46 = vpop.permute.xlu1 %694  ;;  %v691_v47 = vpop.permute.xlu0 %690 }
  0x97   : > { %v777_v6 = vmul.f32 %v1424_v8, %v691_v47  ;;  %v920_v1 = vmul.f32 %v1242_v2, %v907_v43  ;;  %v934_v49 = vmul.f32 %v1244_v42, %v1495_v44  ;;  %v778_v56 = vmul.f32 %v1424_v8, %v695_v46  ;;  %v1256_v11 = vpop.eup %1255  ;;  %v1541_v47 = vld [vmem:[%s411_s24] sm:$0xff] }
  0x98   : > { %v1258_v62 = vpop.eup %1257 }
  0x99   : > { %v1500_v51 = vadd.f32 %v920_v1, %v776_v19  ;;  %v1502_v52 = vadd.f32 %v934_v49, %v777_v6 }
  0x9a   : > { %v706_v53 = vpop.permute.xlu1 %705  ;;  %v702_v54 = vpop.permute.xlu0 %701 }
  0x9b   : > { %v779_v57 = vmul.f32 %v1434_v15, %v702_v54  ;;  %v935_v13 = vmul.f32 %v1246_v45, %v1500_v51  ;;  %v949_v58 = vmul.f32 %v1248_v50, %v1502_v52  ;;  %v780_v7 = vmul.f32 %v1434_v15, %v706_v53 }
  0x9d   : > { %v1508_v61 = vadd.f32 %v935_v13, %v778_v56  ;;  %v1510_v63 = vadd.f32 %v949_v58, %v779_v57 }
  0x9e   : > { %v717_v0 = vpop.permute.xlu1 %716  ;;  %v713_v3 = vpop.permute.xlu0 %712 }
  0x9f   : > { %v781_v9 = vmul.f32 %v1437_v16, %v713_v3  ;;  %v950_v8 = vmul.f32 %v1250_v55, %v1508_v61  ;;  %v964_v10 = vmul.f32 %v1252_v59, %v1510_v63  ;;  %v782_v21 = vmul.f32 %v1437_v16, %v717_v0 }
  0xa1   : > { %v1516_v12 = vadd.f32 %v950_v8, %v780_v7  ;;  %v1518_v20 = vadd.f32 %v964_v10, %v781_v9 }
  0xa2   : > { %v795_v17 = vpop.permute.xlu1 %794  ;;  %v791_v22 = vpop.permute.xlu0 %790 }
  0xa3   : > { %v878_v25 = vmul.f32 %v1475_v14, %v795_v17  ;;  %v877_v15 = vmul.f32 %v1469_v60, %v791_v22  ;;  %v965_v26 = vmul.f32 %v1254_v4, %v1516_v12  ;;  %v979_v27 = vmul.f32 %v1256_v11, %v1518_v20 }
  0xa5   : > { %v881_v28 = vsel %vm879_vm2, %v878_v25, 0.0  ;;  %v880_v30 = vsel %vm879_vm2, %v877_v15, 0.0  ;;  %v1527_v32 = vadd.f32 %v965_v26, %v782_v21 }
  0xa6   : > { %v882_v16 = vadd.f32 %v881_v28, %v880_v30  ;;  %v806_v23 = vpop.permute.xlu1 %805  ;;  %v802_v29 = vpop.permute.xlu0 %801 }
  0xa7   : > { %v894_v35 = vmul.f32 %v1485_v33, %v806_v23  ;;  %v893_v14 = vmul.f32 %v1477_v18, %v802_v29  ;;  %v980_v60 = vmul.f32 %v1258_v62, %v1527_v32 }
  0xa8   : > { %v883_v36 = vrot.slane %v882_v16, 4 }
  0xa9   : > { %v896_v31 = vsel %vm879_vm2, %v894_v35, 0.0  ;;  %v895_v5 = vsel %vm879_vm2, %v893_v14, 0.0 }
  0xaa   : > { %v884_v2 = vadd.f32 %v883_v36, %v882_v16  ;;  %v897_v37 = vadd.f32 %v896_v31, %v895_v5  ;;  %v817_v38 = vpop.permute.xlu1 %816  ;;  %v813_v39 = vpop.permute.xlu0 %812 }
  0xab   : > { %v909_v41 = vmul.f32 %v907_v43, %v817_v38  ;;  %v908_v33 = vmul.f32 %v1487_v34, %v813_v39  ;;  %v1195_v34 = vmul.f32 -1.442695, %v1541_v47 }
  0xac   : > { %v885_v42 = vrot.slane %v884_v2, 2  ;;  %v898_v18 = vrot.slane %v897_v37, 4 }
  0xad   : > { %v911_v45 = vsel %vm879_vm2, %v909_v41, 0.0  ;;  %v910_v46 = vsel %vm879_vm2, %v908_v33, 0.0  ;;  %1259 = vpow2.f32 %v1195_v34 }
  0xae   : > { %v886_v48 = vadd.f32 %v885_v42, %v884_v2  ;;  %v899_v19 = vadd.f32 %v898_v18, %v897_v37  ;;  %v912_v6 = vadd.f32 %v911_v45, %v910_v46  ;;  %v728_v1 = vpop.permute.xlu1 %727  ;;  %v724_v49 = vpop.permute.xlu0 %723 }
  0xaf   : > { %v784_v50 = vmul.f32 %v1445_v24, %v728_v1  ;;  %v783_v53 = vmul.f32 %v1445_v24, %v724_v49 }
  0xb0   : > { %v900_v43 = vrot.slane %v899_v19, 2  ;;  %v913_v54 = vrot.slane %v912_v6, 4  ;;  %v887_v57 = vrot.slane %v886_v48, 1 }
  0xb1   : > { %v982_v55 = vadd.f32 %v980_v60, %v784_v50  ;;  %v981_v56 = vadd.f32 %v979_v27, %v783_v53 }
  0xb2   : > { %v901_v13 = vadd.f32 %v900_v43, %v899_v19  ;;  %v914_v58 = vadd.f32 %v913_v54, %v912_v6  ;;  %v828_v59 = vpop.permute.xlu1 %827  ;;  %v824_v0 = vpop.permute.xlu0 %823  ;;  %v888_v10 = vadd.f32 %v887_v57, %v886_v48 }
  0xb3   : > { %v924_v3 = vmul.f32 %v1500_v51, %v828_v59  ;;  %v923_v4 = vmul.f32 %v1495_v44, %v824_v0 }
  0xb4   : > { %v902_v7 = vrot.slane %v901_v13, 1  ;;  %v915_v9 = vrot.slane %v914_v58, 2 }
  0xb5   : > { %v926_v24 = vsel %vm879_vm2, %v924_v3, 0.0  ;;  %v925_v8 = vsel %vm879_vm2, %v923_v4, 0.0 }
  0xb6   : > { %v903_v11 = vadd.f32 %v902_v7, %v901_v13  ;;  %v916_v21 = vadd.f32 %v915_v9, %v914_v58  ;;  %v927_v17 = vadd.f32 %v926_v24, %v925_v8  ;;  %v839_v22 = vpop.permute.xlu1 %838  ;;  %v835_v25 = vpop.permute.xlu0 %834 }
  0xb7   : > { %v939_v15 = vmul.f32 %v1508_v61, %v839_v22  ;;  %v938_v51 = vmul.f32 %v1502_v52, %v835_v25  ;;  %v1260_v2 = vpop.eup %1259  ;;  %v1194_v25 = vld [vmem:[%s1589_s6] ss:$0 sm:$0xff] }
  0xb8   : > { %v995_v26 = vsel %vm994_vm3, %v888_v10, %v903_v11  ;;  %v917_v44 = vrot.slane %v916_v21, 1  ;;  %v928_v27 = vrot.slane %v927_v17, 4  ;;  %v1019_v19 = vadd.f32 1.0, %v1260_v2 }
  0xb9   : > { %v941_v62 = vsel %vm879_vm2, %v939_v15, 0.0  ;;  %v940_v28 = vsel %vm879_vm2, %v938_v51, 0.0 }
  0xba   : > { %v918_v30 = vadd.f32 %v917_v44, %v916_v21  ;;  %v929_v16 = vadd.f32 %v928_v27, %v927_v17  ;;  %v942_v23 = vadd.f32 %v941_v62, %v940_v28  ;;  %v850_v29 = vpop.permute.xlu1 %849  ;;  %v846_v35 = vpop.permute.xlu0 %845  ;;  %1261 = vrcp.f32 %v1019_v19 }
  0xbb   : > { %v954_v14 = vmul.f32 %v1516_v12, %v850_v29  ;;  %v953_v60 = vmul.f32 %v1510_v63, %v846_v35  ;;  %v1014_v62 = vmul.f32 %v1194_v25, %v1403_v40 }
  0xbc   : > { %v997_v61 = vsel %vm996_vm4, %v995_v26, %v918_v30  ;;  %v930_v36 = vrot.slane %v929_v16, 2  ;;  %v943_v52 = vrot.slane %v942_v23, 4 }
  0xbd   : > { %v956_v31 = vsel %vm879_vm2, %v954_v14, 0.0  ;;  %v955_v5 = vsel %vm879_vm2, %v953_v60, 0.0 }
  0xbe   : > { %v931_v37 = vadd.f32 %v930_v36, %v929_v16  ;;  %v944_v38 = vadd.f32 %v943_v52, %v942_v23  ;;  %v957_v39 = vadd.f32 %v956_v31, %v955_v5  ;;  %v861_v41 = vpop.permute.xlu1 %860  ;;  %v857_v33 = vpop.permute.xlu0 %856 }
  0xbf   : > { %v969_v42 = vmul.f32 %v1527_v32, %v861_v41  ;;  %v968_v18 = vmul.f32 %v1518_v20, %v857_v33 }
  0xc0   : > { %v932_v12 = vrot.slane %v931_v37, 1  ;;  %v945_v45 = vrot.slane %v944_v38, 2  ;;  %v958_v63 = vrot.slane %v957_v39, 4 }
  0xc1   : > { %v971_v46 = vsel %vm879_vm2, %v969_v42, 0.0  ;;  %v970_v48 = vsel %vm879_vm2, %v968_v18, 0.0 }
  0xc2   : > { %v933_v6 = vadd.f32 %v932_v12, %v931_v37  ;;  %v946_v1 = vadd.f32 %v945_v45, %v944_v38  ;;  %v959_v49 = vadd.f32 %v958_v63, %v957_v39  ;;  %v972_v50 = vadd.f32 %v971_v46, %v970_v48  ;;  %v872_v53 = vpop.permute.xlu1 %871  ;;  %v868_v43 = vpop.permute.xlu0 %867 }
  0xc3   : > { %v984_v54 = vmul.f32 %v982_v55, %v872_v53  ;;  %v983_v34 = vmul.f32 %v981_v56, %v868_v43 }
  0xc4   : > { %v999_v32 = vsel %vm998_vm5, %v997_v61, %v933_v6  ;;  %v947_v57 = vrot.slane %v946_v1, 1  ;;  %v960_v20 = vrot.slane %v959_v49, 2  ;;  %v973_v13 = vrot.slane %v972_v50, 4  ;;  %v1262_v26 = vpop.eup %1261 }
  0xc5   : > { %v986_v58 = vsel %vm879_vm2, %v984_v54, 0.0  ;;  %v985_v59 = vsel %vm879_vm2, %v983_v34, 0.0  ;;  %v1022_v30 = vmul.f32 %v1262_v26, %v1541_v47 }
  0xc6   : > { %v948_v0 = vadd.f32 %v947_v57, %v946_v1  ;;  %v961_v3 = vadd.f32 %v960_v20, %v959_v49  ;;  %v974_v4 = vadd.f32 %v973_v13, %v972_v50  ;;  %v987_v7 = vadd.f32 %v986_v58, %v985_v59 }
  0xc8   : > { %v1001_v9 = vsel %vm1000_vm6, %v999_v32, %v948_v0  ;;  %v962_v24 = vrot.slane %v961_v3, 1  ;;  %v975_v8 = vrot.slane %v974_v4, 2  ;;  %v988_v10 = vrot.slane %v987_v7, 4 }
  0xca   : > { %v963_v55 = vadd.f32 %v962_v24, %v961_v3  ;;  %v976_v56 = vadd.f32 %v975_v8, %v974_v4  ;;  %v989_v11 = vadd.f32 %v988_v10, %v987_v7 }
  0xcc   : > { %v1003_v21 = vsel %vm1002_vm7, %v1001_v9, %v963_v55  ;;  %v977_v17 = vrot.slane %v976_v56, 1  ;;  %v990_v22 = vrot.slane %v989_v11, 2 }
  0xce   : > { %v978_v15 = vadd.f32 %v977_v17, %v976_v56  ;;  %v991_v51 = vadd.f32 %v990_v22, %v989_v11 }
  0xd0   : > { %v1005_v44 = vsel %vm1004_vm8, %v1003_v21, %v978_v15  ;;  %v992_v27 = vrot.slane %v991_v51, 1 }
  0xd2   : > { %v993_v28 = vadd.f32 %v992_v27, %v991_v51 }
  0xd4   : > { %v1007_v16 = vsel %vm1006_vm9, %v1005_v44, %v993_v28 }
  0xd5   : > { %v1015_v23 = vadd.f32 %v1014_v62, %v1007_v16 }
  0xd7   : > { %v1023_v29 = vmul.f32 %v1022_v30, %v1015_v23 }
  0xd9   : > { %1024 = vst.msk [vmem:[%s425_s10] sm:$0xff] %vm879_vm2, %v1023_v29 }
  0xda PF: > { %s17_s26 = sadd.s32 1, %s1285_s26   ;;  %s1591_s24 = smov %s1281_s25 }
  0xdb   : > { %p14_p5 = scmp.ge.s32.totalorder %s17_s26, 4   ;;  %s1592_s25 = smov %s1594_s27 }
  0xdd   :  { %16 = sbr.rel (!%p14_p5) target bundleno = 2 (0x2), region = 96 }

// kernel: _lambda_.22
= control target key start
LH: loop header
LB: loop body
LE: loop exit
PB: predicated region body
PF: predicated region fallthrough
CT: control target
= control target key end

     0   :  { %v210_v0 = vmov 0.0   ;;  %vm211_vm0 = vmmov 0   ;;  %s282_s1 = inlined_call_operand.vmem [shape: bf16[128,128], index: 1, kind: input, shape index: {}]   ;;  %s283_s0 = inlined_call_operand.vmem [shape: f32[16,128], index: 0, kind: input, shape index: {}]   ;;  %s284_s2 = inlined_call_operand.vmem [shape: f32[1,128], index: 2, kind: input, shape index: {}]   ;;  %s285_s3 = inlined_call_operand.vmem [shape: f32[16,128], index: 3, kind: input, shape index: {}]   ;;  %s286_s4 = inlined_call_operand.vmem [shape: f32[16,128], index: 4, kind: output, shape index: {}]  }
   0x1   :  { %180 = vmatprep.subr.bf16.mxu0 %v210_v0  ;;  %v202_v1 = vld [vmem:[%s282_s1] sm:$0xff]   ;;  %196 = vmatprep.mubr.msk.bf16.mxu0 %vm211_vm0, %v210_v0  ;;  %v203_v2 = vld [vmem:[%s282_s1 + $0x8] sm:$0xff]   ;;  %v204_v3 = vld [vmem:[%s282_s1 + $0x10] sm:$0xff]  }
   0x2   :  { %181 = vmatpush3.bf16.msra.mxu0 %v202_v1  ;;  %v205_v4 = vld [vmem:[%s282_s1 + $0x18] sm:$0xff]   ;;  %v206_v5 = vld [vmem:[%s282_s1 + $0x20] sm:$0xff]   ;;  %v207_v6 = vld [vmem:[%s282_s1 + $0x28] sm:$0xff]  }
   0x3   :  { %182 = vmatprep.subr.bf16.mxu0 %v210_v0  ;;  %v208_v7 = vld [vmem:[%s282_s1 + $0x30] sm:$0xff]   ;;  %v209_v8 = vld [vmem:[%s282_s1 + $0x38] sm:$0xff]   ;;  %v26_v9 = vld [vmem:[%s283_s0] sm:$0xff] }
   0x4   :  { %v27_v10 = vld [vmem:[%s283_s0 + $0x8] sm:$0xff]  ;;  %v170_v12 = vld [vmem:[%s284_s2] ss:$0 sm:$0xff] }
   0x5   :  { %v28_v11 = vpack.c.bf16 %v27_v10, %v26_v9  ;;  %v152_v14 = vld [vmem:[%s285_s3] sm:$0xff]  ;;  %v153_v18 = vld [vmem:[%s285_s3 + $0x8] sm:$0xff] }
   0x6   :  { %183 = vmatpush3.bf16.msra.mxu0 %v203_v2 }
   0x7   :  { %184 = vmatprep.subr.bf16.mxu0 %v210_v0 }
   0xa   :  { %185 = vmatpush3.bf16.msra.mxu0 %v204_v3 }
   0xb   :  { %186 = vmatprep.subr.bf16.mxu0 %v210_v0 }
   0xe   :  { %187 = vmatpush3.bf16.msra.mxu0 %v205_v4 }
   0xf   :  { %188 = vmatprep.subr.bf16.mxu0 %v210_v0 }
  0x12   :  { %189 = vmatpush3.bf16.msra.mxu0 %v206_v5 }
  0x13   :  { %190 = vmatprep.subr.bf16.mxu0 %v210_v0 }
  0x16   :  { %191 = vmatpush3.bf16.msra.mxu0 %v207_v6 }
  0x17   :  { %192 = vmatprep.subr.bf16.mxu0 %v210_v0 }
  0x1a   :  { %193 = vmatpush3.bf16.msra.mxu0 %v208_v7 }
  0x1b   :  { %194 = vmatprep.subr.bf16.mxu0 %v210_v0 }
  0x1e   :  { %195 = vmatpush3.bf16.msra.mxu0 %v209_v8 }
  0x21   :  { %197 = vmatmul.mubr.bf16.vlgmr.msra.gmra.mrb[0].mxu0 %v28_v11 }
  0xf4   :  { %v127_v13 = vpop.f32.mrb[0].mxu0 }
  0xf5   :  { %v150_v15 = vadd.f32 %v170_v12, %v127_v13  ;;  %v198_v16 = vpop.f32.mrb[1].mxu0 }
  0xf6   :  { %v130_v17 = vpop.f32.mrb[2].mxu0 }
  0xf7   :  { %v154_v19 = vadd.f32 %v152_v14, %v150_v15  ;;  %v151_v20 = vadd.f32 %v170_v12, %v130_v17  ;;  %v199_v21 = vpop.f32.mrb[3].mxu0 }
  0xf9   :  { %156 = vst [vmem:[%s286_s4] sm:$0xff] %v154_v19  ;;  %v155_v22 = vadd.f32 %v153_v18, %v151_v20 }
  0xfb   :  { %157 = vst [vmem:[%s286_s4 + $0x8] sm:$0xff] %v155_v22 }

</bundles_post_ra>
